<compile_context>
chip_gen: v7x
topology: tpu7x:2x2x1
jax: 0.10.0
libtpu: 0.0.40
codegen_flags: <defaults>
</compile_context>

<pallas_src>
import jax
import jax.numpy as jnp
from jax.experimental import pallas as pl
from jax.experimental.pallas import tpu as pltpu

# Logical layer widths of the torch Critic and their lane-aligned (x128) pads.
_DIMS = (800, 500, 300)
_DIMS_PAD = (896, 512, 384)


def _round_up(n, m):
    return ((n + m - 1) // m) * m


def _critic_kernel(x_ref,
                   w1_ref, b1_ref,
                   w2_ref, b2_ref,
                   w3_ref, b3_ref,
                   w4_ref, b4_ref,
                   o_ref):
    """Fused MLP forward for one (TB, state_dim) batch tile.

    Weights are bf16 (lane-padded); biases f32. Matmuls accumulate in f32 on
    the MXU; bias add + ReLU run in f32. The final 300->1 layer is a
    multiply + lane reduction on the VPU/XLU.
    """
    h = x_ref[...].astype(jnp.bfloat16)

    h = jnp.dot(h, w1_ref[...], preferred_element_type=jnp.float32) + b1_ref[...]
    h = jnp.maximum(h, 0.0)

    h = jnp.dot(h.astype(jnp.bfloat16), w2_ref[...],
                preferred_element_type=jnp.float32) + b2_ref[...]
    h = jnp.maximum(h, 0.0)

    h = jnp.dot(h.astype(jnp.bfloat16), w3_ref[...],
                preferred_element_type=jnp.float32) + b3_ref[...]
    h = jnp.maximum(h, 0.0)

    # Layer 4 as a reduction: (TB, 384) * (1, 384) -> sum over lanes -> (TB, 1)
    out = jnp.sum(h * w4_ref[...], axis=-1, keepdims=True) + b4_ref[...]
    o_ref[...] = out.astype(o_ref.dtype)


def init_critic_params(state_dim, key):
    """Torch-style Linear init (uniform +-1/sqrt(fan_in)), stored (in, out)."""
    dims = (state_dim,) + _DIMS + (1,)
    params = {}
    keys = jax.random.split(key, 8)
    for i in range(4):
        fan_in = dims[i]
        bound = float(fan_in) ** -0.5
        params[f"w{i + 1}"] = jax.random.uniform(
            keys[2 * i], (dims[i], dims[i + 1]),
            minval=-bound, maxval=bound, dtype=jnp.float32)
        params[f"b{i + 1}"] = jax.random.uniform(
            keys[2 * i + 1], (1, dims[i + 1]),
            minval=-bound, maxval=bound, dtype=jnp.float32)
    return params


def prepare_params(params):
    """Zero-pad hidden dims to lane-aligned sizes and cast weights to bf16."""
    p1, p2, p3 = _DIMS_PAD
    s = params["w1"].shape[0]

    def pad2(a, rows, cols):
        return jnp.pad(a, ((0, rows - a.shape[0]), (0, cols - a.shape[1])))

    return {
        "w1": pad2(params["w1"], s, p1).astype(jnp.bfloat16),
        "b1": pad2(params["b1"], 1, p1).astype(jnp.float32),
        "w2": pad2(params["w2"], p1, p2).astype(jnp.bfloat16),
        "b2": pad2(params["b2"], 1, p2).astype(jnp.float32),
        "w3": pad2(params["w3"], p2, p3).astype(jnp.bfloat16),
        "b3": pad2(params["b3"], 1, p3).astype(jnp.float32),
        # Final layer kept f32 as a (1, 384) row for the in-kernel reduction.
        "w4": pad2(params["w4"].T, 1, p3).astype(jnp.float32),
        "b4": params["b4"].astype(jnp.float32),  # (1, 1)
    }


def critic_forward(x, prepared, *, block_b=256):
    """x: (B, state_dim) f32. prepared: output of prepare_params. -> (B, 1) f32."""
    B, S = x.shape
    TB = min(block_b, _round_up(B, 8))      # batch tile, multiple of 8 sublanes
    B_pad = _round_up(B, TB)
    if B_pad != B:
        x = jnp.pad(x, ((0, B_pad - B), (0, 0)))

    operands = (
        x,
        prepared["w1"], prepared["b1"],
        prepared["w2"], prepared["b2"],
        prepared["w3"], prepared["b3"],
        prepared["w4"], prepared["b4"],
    )

    def resident(shape):
        # Whole-array block, same block index every grid step -> VMEM-resident.
        return pl.BlockSpec(shape, lambda i: (0, 0))

    in_specs = [pl.BlockSpec((TB, S), lambda i: (i, 0))]
    in_specs += [resident(op.shape) for op in operands[1:]]
    out_spec = pl.BlockSpec((TB, 1), lambda i: (i, 0))

    d0, d1, d2, d3 = (S,) + _DIMS
    weight_bytes = sum(int(op.size) * op.dtype.itemsize for op in operands[1:])
    cost = pl.CostEstimate(
        flops=2 * B * (d0 * d1 + d1 * d2 + d2 * d3 + d3),
        bytes_accessed=int(weight_bytes + x.size * x.dtype.itemsize + B_pad * 4),
        transcendentals=0,
    )

    out = pl.pallas_call(
        _critic_kernel,
        out_shape=jax.ShapeDtypeStruct((B_pad, 1), jnp.float32),
        grid=(B_pad // TB,),
        in_specs=in_specs,
        out_specs=out_spec,
        compiler_params=pltpu.CompilerParams(
            dimension_semantics=("parallel",),
        ),
        cost_estimate=cost,
    )(*operands)

    return out[:B] if B_pad != B else out
    # TODO(synk): for repeated tiny-batch RL inference, keep weights
    # VMEM-resident across calls (cross-call prefetch) instead of re-DMAing
    # them every invocation.


def critic_reference_f32(x, params):
    """Pure f32 reference of the original torch module."""
    h = jnp.maximum(x @ params["w1"] + params["b1"], 0.0)
    h = jnp.maximum(h @ params["w2"] + params["b2"], 0.0)
    h = jnp.maximum(h @ params["w3"] + params["b3"], 0.0)
    return h @ params["w4"] + params["b4"]


def critic_reference_mixed(x, prepared):
    """Plain-JAX mirror of the kernel's bf16-weight / f32-accumulate math."""
    h = x.astype(jnp.bfloat16)
    h = jnp.maximum(jnp.dot(h, prepared["w1"],
                            preferred_element_type=jnp.float32) + prepared["b1"], 0.0)
    h = jnp.maximum(jnp.dot(h.astype(jnp.bfloat16), prepared["w2"],
                            preferred_element_type=jnp.float32) + prepared["b2"], 0.0)
    h = jnp.maximum(jnp.dot(h.astype(jnp.bfloat16), prepared["w3"],
                            preferred_element_type=jnp.float32) + prepared["b3"], 0.0)
    return jnp.sum(h * prepared["w4"], axis=-1, keepdims=True) + prepared["b4"]


if __name__ == "__main__":
    key = jax.random.PRNGKey(0)
    k_param, k_x1, k_x2 = jax.random.split(key, 3)

    state_dim = 32
    logical = init_critic_params(state_dim, k_param)
    prepared = prepare_params(logical)

    # Small batch (exercises the B < tile padding path).
    x_small = jax.random.normal(k_x1, (2, state_dim), dtype=jnp.float32)
    out_small = jax.block_until_ready(critic_forward(x_small, prepared))
    assert out_small.shape == (2, 1)

    # Larger, non-tile-multiple batch (exercises the batch grid / parallel axis).
    x_big = jax.random.normal(k_x2, (300, state_dim), dtype=jnp.float32)
    out_big = jax.block_until_ready(critic_forward(x_big, prepared))
    assert out_big.shape == (300, 1)

    for x, out in ((x_small, out_small), (x_big, out_big)):
        ref_mixed = critic_reference_mixed(x, prepared)
        ref_f32 = critic_reference_f32(x, logical)
        assert jnp.allclose(out, ref_mixed, atol=1e-4, rtol=1e-4), \
            "kernel != mixed-precision reference"
        assert jnp.allclose(out, ref_f32, atol=5e-2, rtol=5e-2), \
            "kernel drifted too far from f32 reference"

    print("KERNEL_OK")
</pallas_src>

<mosaic_0001>
module attributes {stable_mosaic.version = 11 : i64} {
  func.func @_critic_kernel(%arg0: i32, %arg1: memref<8x32xf32, #tpu.memory_space<vmem>>, %arg2: memref<32x896xbf16, #tpu.memory_space<vmem>>, %arg3: memref<1x896xf32, #tpu.memory_space<vmem>>, %arg4: memref<896x512xbf16, #tpu.memory_space<vmem>>, %arg5: memref<1x512xf32, #tpu.memory_space<vmem>>, %arg6: memref<512x384xbf16, #tpu.memory_space<vmem>>, %arg7: memref<1x384xf32, #tpu.memory_space<vmem>>, %arg8: memref<1x384xf32, #tpu.memory_space<vmem>>, %arg9: memref<1x1xf32, #tpu.memory_space<vmem>>, %arg10: memref<8x1xf32, #tpu.memory_space<vmem>>) attributes {dimension_semantics = [#tpu.dimension_semantics<parallel>], iteration_bounds = array<i64: 1>, scalar_prefetch = 0 : i64, scratch_operands = 0 : i64, tpu.core_type = #tpu.core_type<tc>, window_params = [{transform_indices = @transform_0, window_bounds = array<i64: 8, 32>}, {pipeline_mode = #tpu.pipeline_mode<synchronous>, transform_indices = @transform_1, window_bounds = array<i64: 32, 896>}, {pipeline_mode = #tpu.pipeline_mode<synchronous>, transform_indices = @transform_2, window_bounds = array<i64: 1, 896>}, {pipeline_mode = #tpu.pipeline_mode<synchronous>, transform_indices = @transform_3, window_bounds = array<i64: 896, 512>}, {pipeline_mode = #tpu.pipeline_mode<synchronous>, transform_indices = @transform_4, window_bounds = array<i64: 1, 512>}, {pipeline_mode = #tpu.pipeline_mode<synchronous>, transform_indices = @transform_5, window_bounds = array<i64: 512, 384>}, {pipeline_mode = #tpu.pipeline_mode<synchronous>, transform_indices = @transform_6, window_bounds = array<i64: 1, 384>}, {pipeline_mode = #tpu.pipeline_mode<synchronous>, transform_indices = @transform_7, window_bounds = array<i64: 1, 384>}, {pipeline_mode = #tpu.pipeline_mode<synchronous>, transform_indices = @transform_8, window_bounds = array<i64: 1, 1>}, {transform_indices = @transform_9, window_bounds = array<i64: 8, 1>}]} {
    %c0 = arith.constant 0 : index
    %c0_0 = arith.constant 0 : index
    %0 = vector.load %arg1[%c0, %c0_0] : memref<8x32xf32, #tpu.memory_space<vmem>>, vector<8x32xf32>
    %1 = arith.truncf %0 : vector<8x32xf32> to vector<8x32xbf16>
    %c0_1 = arith.constant 0 : index
    %c0_2 = arith.constant 0 : index
    %2 = vector.load %arg2[%c0_1, %c0_2] : memref<32x896xbf16, #tpu.memory_space<vmem>>, vector<32x896xbf16>
    %cst = arith.constant dense<0.000000e+00> : vector<8x896xf32>
    %3 = tpu.matmul %1, %2, %cst {dimension_numbers = #tpu.dot_dimension_numbers<[1], [0], [0], [1], [0, 0, 1, 1], [], []>} : vector<8x32xbf16>, vector<32x896xbf16>, vector<8x896xf32> -> vector<8x896xf32>
    %c0_3 = arith.constant 0 : index
    %c0_4 = arith.constant 0 : index
    %4 = vector.load %arg3[%c0_3, %c0_4] : memref<1x896xf32, #tpu.memory_space<vmem>>, vector<1x896xf32>
    %5 = vector.broadcast %4 : vector<1x896xf32> to vector<8x896xf32>
    %6 = arith.addf %3, %5 : vector<8x896xf32>
    %cst_5 = arith.constant 0.000000e+00 : f32
    %7 = vector.broadcast %cst_5 : f32 to vector<8x896xf32>
    %8 = arith.maximumf %6, %7 : vector<8x896xf32>
    %9 = arith.truncf %8 : vector<8x896xf32> to vector<8x896xbf16>
    %c0_6 = arith.constant 0 : index
    %c0_7 = arith.constant 0 : index
    %10 = vector.load %arg4[%c0_6, %c0_7] : memref<896x512xbf16, #tpu.memory_space<vmem>>, vector<896x512xbf16>
    %cst_8 = arith.constant dense<0.000000e+00> : vector<8x512xf32>
    %11 = tpu.matmul %9, %10, %cst_8 {dimension_numbers = #tpu.dot_dimension_numbers<[1], [0], [0], [1], [0, 0, 1, 1], [], []>} : vector<8x896xbf16>, vector<896x512xbf16>, vector<8x512xf32> -> vector<8x512xf32>
    %c0_9 = arith.constant 0 : index
    %c0_10 = arith.constant 0 : index
    %12 = vector.load %arg5[%c0_9, %c0_10] : memref<1x512xf32, #tpu.memory_space<vmem>>, vector<1x512xf32>
    %13 = vector.broadcast %12 : vector<1x512xf32> to vector<8x512xf32>
    %14 = arith.addf %11, %13 : vector<8x512xf32>
    %cst_11 = arith.constant 0.000000e+00 : f32
    %15 = vector.broadcast %cst_11 : f32 to vector<8x512xf32>
    %16 = arith.maximumf %14, %15 : vector<8x512xf32>
    %17 = arith.truncf %16 : vector<8x512xf32> to vector<8x512xbf16>
    %c0_12 = arith.constant 0 : index
    %c0_13 = arith.constant 0 : index
    %18 = vector.load %arg6[%c0_12, %c0_13] : memref<512x384xbf16, #tpu.memory_space<vmem>>, vector<512x384xbf16>
    %cst_14 = arith.constant dense<0.000000e+00> : vector<8x384xf32>
    %19 = tpu.matmul %17, %18, %cst_14 {dimension_numbers = #tpu.dot_dimension_numbers<[1], [0], [0], [1], [0, 0, 1, 1], [], []>} : vector<8x512xbf16>, vector<512x384xbf16>, vector<8x384xf32> -> vector<8x384xf32>
    %c0_15 = arith.constant 0 : index
    %c0_16 = arith.constant 0 : index
    %20 = vector.load %arg7[%c0_15, %c0_16] : memref<1x384xf32, #tpu.memory_space<vmem>>, vector<1x384xf32>
    %21 = vector.broadcast %20 : vector<1x384xf32> to vector<8x384xf32>
    %22 = arith.addf %19, %21 : vector<8x384xf32>
    %cst_17 = arith.constant 0.000000e+00 : f32
    %23 = vector.broadcast %cst_17 : f32 to vector<8x384xf32>
    %24 = arith.maximumf %22, %23 : vector<8x384xf32>
    %c0_18 = arith.constant 0 : index
    %c0_19 = arith.constant 0 : index
    %25 = vector.load %arg8[%c0_18, %c0_19] : memref<1x384xf32, #tpu.memory_space<vmem>>, vector<1x384xf32>
    %26 = vector.broadcast %25 : vector<1x384xf32> to vector<8x384xf32>
    %27 = arith.mulf %24, %26 : vector<8x384xf32>
    %cst_20 = arith.constant dense<0.000000e+00> : vector<8xf32>
    %28 = vector.multi_reduction <add>, %27, %cst_20 [1] : vector<8x384xf32> to vector<8xf32>
    %29 = vector.shape_cast %28 : vector<8xf32> to vector<8x1xf32>
    %c0_21 = arith.constant 0 : index
    %c0_22 = arith.constant 0 : index
    %30 = vector.load %arg9[%c0_21, %c0_22] : memref<1x1xf32, #tpu.memory_space<vmem>>, vector<1x1xf32>
    %31 = vector.broadcast %30 : vector<1x1xf32> to vector<8x1xf32>
    %32 = arith.addf %29, %31 : vector<8x1xf32>
    %c0_23 = arith.constant 0 : index
    %c0_24 = arith.constant 0 : index
    %33 = vector.load %arg10[%c0_23, %c0_24] : memref<8x1xf32, #tpu.memory_space<vmem>>, vector<8x1xf32>
    tpu.vector_store %arg10[%c0_23, %c0_24], %32 {strides = array<i32>} : memref<8x1xf32, #tpu.memory_space<vmem>>, vector<8x1xf32>,
    return
  }
  func.func @transform_0(%arg0: i32) -> (i32, i32) {
    %c0_i32 = arith.constant 0 : i32
    %c0_i32_0 = arith.constant 0 : i32
    return %arg0, %c0_i32 : i32, i32
  }
  func.func @transform_1(%arg0: i32) -> (i32, i32) {
    %c0_i32 = arith.constant 0 : i32
    %c0_i32_0 = arith.constant 0 : i32
    %c0_i32_1 = arith.constant 0 : i32
    return %c0_i32, %c0_i32_0 : i32, i32
  }
  func.func @transform_2(%arg0: i32) -> (i32, i32) {
    %c0_i32 = arith.constant 0 : i32
    %c0_i32_0 = arith.constant 0 : i32
    %c0_i32_1 = arith.constant 0 : i32
    return %c0_i32, %c0_i32_0 : i32, i32
  }
  func.func @transform_3(%arg0: i32) -> (i32, i32) {
    %c0_i32 = arith.constant 0 : i32
    %c0_i32_0 = arith.constant 0 : i32
    %c0_i32_1 = arith.constant 0 : i32
    return %c0_i32, %c0_i32_0 : i32, i32
  }
  func.func @transform_4(%arg0: i32) -> (i32, i32) {
    %c0_i32 = arith.constant 0 : i32
    %c0_i32_0 = arith.constant 0 : i32
    %c0_i32_1 = arith.constant 0 : i32
    return %c0_i32, %c0_i32_0 : i32, i32
  }
  func.func @transform_5(%arg0: i32) -> (i32, i32) {
    %c0_i32 = arith.constant 0 : i32
    %c0_i32_0 = arith.constant 0 : i32
    %c0_i32_1 = arith.constant 0 : i32
    return %c0_i32, %c0_i32_0 : i32, i32
  }
  func.func @transform_6(%arg0: i32) -> (i32, i32) {
    %c0_i32 = arith.constant 0 : i32
    %c0_i32_0 = arith.constant 0 : i32
    %c0_i32_1 = arith.constant 0 : i32
    return %c0_i32, %c0_i32_0 : i32, i32
  }
  func.func @transform_7(%arg0: i32) -> (i32, i32) {
    %c0_i32 = arith.constant 0 : i32
    %c0_i32_0 = arith.constant 0 : i32
    %c0_i32_1 = arith.constant 0 : i32
    return %c0_i32, %c0_i32_0 : i32, i32
  }
  func.func @transform_8(%arg0: i32) -> (i32, i32) {
    %c0_i32 = arith.constant 0 : i32
    %c0_i32_0 = arith.constant 0 : i32
    %c0_i32_1 = arith.constant 0 : i32
    return %c0_i32, %c0_i32_0 : i32, i32
  }
  func.func @transform_9(%arg0: i32) -> (i32, i32) {
    %c0_i32 = arith.constant 0 : i32
    %c0_i32_0 = arith.constant 0 : i32
    return %arg0, %c0_i32 : i32, i32
  }
}

</mosaic_0001>

<bundles_post_ra>
// kernel: tpu_custom_call.1
= control target key start
LH: loop header
LB: loop body
LE: loop exit
PB: predicated region body
PF: predicated region fallthrough
CT: control target
= control target key end

     0   :  { %s4195_s0 = inlined_call_operand.hbm [shape: f32[8,32], index: 0, kind: input, shape index: {}]   ;;  %s4196_s1 = inlined_call_operand.hbm [shape: bf16[32,896], index: 1, kind: input, shape index: {}]   ;;  %s4197_s2 = inlined_call_operand.vmem [shape: f32[1,896], index: 2, kind: input, shape index: {}]   ;;  %s4198_s3 = inlined_call_operand.hbm [shape: bf16[896,512], index: 3, kind: input, shape index: {}]   ;;  %s4199_s4 = inlined_call_operand.vmem [shape: f32[1,512], index: 4, kind: input, shape index: {}]   ;;  %s4200_s5 = inlined_call_operand.hbm [shape: bf16[512,384], index: 5, kind: input, shape index: {}]   ;;  %s4201_s6 = inlined_call_operand.vmem [shape: f32[1,384], index: 6, kind: input, shape index: {}]   ;;  %s4202_s7 = inlined_call_operand.vmem [shape: f32[1,384], index: 7, kind: input, shape index: {}]   ;;  %s4203_s8 = inlined_call_operand.<no memory space> [shape: f32[1,1], index: 8, kind: input, shape index: {}]   ;;  %s4204_s9 = inlined_call_operand.vmem [shape: f32[8,1], index: 9, kind: output, shape index: {}]  }
   0x1   :  { %v14_v0 = vstv %s4203_s8 }
   0x2   :  { %15 = vst [vmem:[#allocation2] sm:$0x1] %v14_v0 }
   0x3   :  { %16 = vsyncpa [#allocation4], 0 }
   0x4   :  { %17 = vsyncpa [#allocation6], 0 }
   0x5   :  { %18 = vsyncpa [#allocation9], 0  ;;  %s3978_s11 = smov [#allocation5]   ;;  %s3884_s15 = scalar_lea.hbm %s4196_s1, 1792 }
   0x6   :  { %s34_s12 = sshll.u32 %s3978_s11, 4  ;;  %p3885_p0 = scmp.ne.s32.totalorder %s4196_s1, %s3884_s15  ;;  %s35_s12 = int_to_ptr.vmem [resolvable:$true] %s34_s12 }
   0x7   :  { %p3888_p1 = scmp.lt.u32.totalorder %s3884_s15, %s4196_s1 }
   0x9   :  { %p3890_p2 = pnand %p3888_p1, %p3885_p0 }
   0xb   :  { %3893 = shalt.err (!%p3890_p2)
}
   0xc   :  { %s3894_s8 = scalar_lea.vmem %s35_s12, 1792  ;;  %p3899_p4 = scmp.lt.s32.totalorder %s35_s12, %s35_s12 }
   0xd   :  { %p3895_p3 = scmp.ne.s32.totalorder %s35_s12, %s3894_s8  ;;  %p3900_p5 = scmp.lt.s32.totalorder %s3894_s8, %s3894_s8 }
   0xf   :  { %p3901_p6 = por %p3900_p5, %p3899_p4 }
  0x11   :  { %p3902_p7 = pnand %p3901_p6, %p3895_p3 }
  0x13   :  { %3905 = shalt.err (!%p3902_p7)
}
  0x14   :  { %s3979_s20 = smov 448   ;;  %s3980_s21 = smov 28  }
  0x15   :  { %40 = dma.hbm_to_vmem [thread:$0]  %s4196_s1, 1792, %s35_s12, [#allocation6], %s3979_s20, %s3979_s20, %s3980_s21  }
  0x16   :  { %s3981_s24 = smov [#allocation3]   ;;  %s3982_s26 = smov [#allocation7]  }
  0x17   :  { %s25_s25 = sshll.u32 %s3981_s24, 4  ;;  %s48_s27 = sshll.u32 %s3982_s26, 4  ;;  %s26_s25 = int_to_ptr.vmem [resolvable:$true] %s25_s25  ;;  %s49_s27 = int_to_ptr.vmem [resolvable:$true] %s48_s27 }
  0x18   :  { %s3906_s30 = scalar_lea.hbm %s4195_s0, 128 }
  0x19   :  { %p3907_p8 = scmp.ne.s32.totalorder %s4195_s0, %s3906_s30  ;;  %p3910_p9 = scmp.lt.u32.totalorder %s3906_s30, %s4195_s0 }
  0x1b   :  { %p3912_p10 = pnand %p3910_p9, %p3907_p8 }
  0x1d   :  { %3915 = shalt.err (!%p3912_p10)
}
  0x1e   :  { %s3916_s1 = scalar_lea.vmem %s26_s25, 128  ;;  %p3921_p12 = scmp.lt.s32.totalorder %s26_s25, %s26_s25 }
  0x1f   :  { %p3917_p11 = scmp.ne.s32.totalorder %s26_s25, %s3916_s1  ;;  %p3922_p13 = scmp.lt.s32.totalorder %s3916_s1, %s3916_s1 }
  0x21   :  { %p3923_p0 = por %p3922_p13, %p3921_p12 }
  0x23   :  { %p3924_p1 = pnand %p3923_p0, %p3917_p11 }
  0x25   :  { %3927 = shalt.err (!%p3924_p1)
}
  0x26   :  { %28 = dma.hbm_to_vmem [thread:$0]  %s4195_s0, 128, %s26_s25, [#allocation4]  }
  0x27   :  { %s3928_s18 = scalar_lea.hbm %s4198_s3, 28672 }
  0x28   :  { %p3929_p2 = scmp.ne.s32.totalorder %s4198_s3, %s3928_s18  ;;  %p3932_p3 = scmp.lt.u32.totalorder %s3928_s18, %s4198_s3 }
  0x2a   :  { %p3934_p4 = pnand %p3932_p3, %p3929_p2 }
  0x2c   :  { %3937 = shalt.err (!%p3934_p4)
}
  0x2d   :  { %s3938_s22 = scalar_lea.vmem %s49_s27, 28672  ;;  %p3943_p6 = scmp.lt.s32.totalorder %s49_s27, %s49_s27 }
  0x2e   :  { %p3939_p5 = scmp.ne.s32.totalorder %s49_s27, %s3938_s22  ;;  %p3944_p7 = scmp.lt.s32.totalorder %s3938_s22, %s3938_s22 }
  0x30   :  { %p3945_p8 = por %p3944_p7, %p3943_p6 }
  0x32   :  { %p3946_p9 = pnand %p3945_p8, %p3939_p5 }
  0x34   :  { %3949 = shalt.err (!%p3946_p9)
}
  0x35   :  { %s3983_s0 = smov 256   ;;  %s3984_s23 = smov 16  }
  0x36   :  { %54 = dma.hbm_to_vmem [thread:$0]  %s4198_s3, 28672, %s49_s27, [#allocation6], %s3983_s0, %s3983_s0, %s3984_s23  }
  0x37   :  { %s3985_s26 = smov [#allocation8]   ;;  %s3950_s10 = scalar_lea.hbm %s4200_s5, 12288 }
  0x38   :  { %s62_s28 = sshll.u32 %s3985_s26, 4  ;;  %p3951_p10 = scmp.ne.s32.totalorder %s4200_s5, %s3950_s10  ;;  %s63_s28 = int_to_ptr.vmem [resolvable:$true] %s62_s28 }
  0x39   :  { %p3954_p11 = scmp.lt.u32.totalorder %s3950_s10, %s4200_s5 }
  0x3b   :  { %p3956_p12 = pnand %p3954_p11, %p3951_p10 }
  0x3d   :  { %3959 = shalt.err (!%p3956_p12)
}
  0x3e   :  { %s3960_s12 = scalar_lea.vmem %s63_s28, 12288  ;;  %p3965_p0 = scmp.lt.s32.totalorder %s63_s28, %s63_s28 }
  0x3f   :  { %p3961_p13 = scmp.ne.s32.totalorder %s63_s28, %s3960_s12  ;;  %p3966_p1 = scmp.lt.s32.totalorder %s3960_s12, %s3960_s12 }
  0x41   :  { %p3967_p2 = por %p3966_p1, %p3965_p0 }
  0x43   :  { %p3968_p3 = pnand %p3967_p2, %p3961_p13 }
  0x45   :  { %3971 = shalt.err (!%p3968_p3)
}
  0x46   :  { %s3986_s3 = smov 192   ;;  %s3987_s27 = smov 12  }
  0x47   :  { %68 = dma.hbm_to_vmem [thread:$0]  %s4200_s5, 12288, %s63_s28, [#allocation9], %s3986_s3, %s3986_s3, %s3987_s27  }
  0x48   :  { %3972 = dma.done.wait [#allocation4], 128  }
  0x49   :  { %3973 = vsyncadd [#allocation4], 4294967168 }
  0x4a   :  { %3974 = dma.done.wait [#allocation6], 30464  }
  0x4b   :  { %3975 = vsyncadd [#allocation6], 4294936832 }
  0x4c   :  { %3976 = dma.done.wait [#allocation9], 12288  }
  0x4d   :  { %3977 = vsyncadd [#allocation9], 4294955008  ;;  %v3988_v1 = vmov 0   ;;  %v3400_v2 = vld [vmem:[#allocation5 + $0x4] ss:$28 sps:$4 sm:$0xff]   ;;  %v88_v10 = vld [vmem:[#allocation3] sm:$0xff] }
  0x4e   :  { %251 = vmatprep.mubr.bf16.mxu0 %v3988_v1  ;;  %292 = vmatprep.mubr.bf16.mxu1 %v3988_v1  ;;  %v3402_v3 = vld [vmem:[#allocation5 + $0xc] ss:$28 sps:$4 sm:$0xff]   ;;  %v3404_v4 = vld [vmem:[#allocation5] ss:$28 sps:$4 sm:$0xff]   ;;  %v3410_v8 = vld [vmem:[#allocation5 + $0x38] ss:$28 sps:$4 sm:$0xff]   ;;  %v89_v11 = vpack.c.bf16 %v88_v10, %v88_v10 }
  0x4f   :  { %219 = vmatprep.subr.bf16.mxu0 %v3400_v2  ;;  %v3405_v5 = vld [vmem:[#allocation5 + $0x8] ss:$28 sps:$4 sm:$0xff]   ;;  %260 = vmatprep.subr.bf16.mxu1 %v3402_v3  ;;  %v3406_v6 = vld [vmem:[#allocation5 + $0x3c] ss:$28 sps:$4 sm:$0xff]   ;;  %vm215_vm0 = vcmask 261120   ;;  %v3989_v14 = vmov 0.0  }
  0x50   :  { %220 = vmatpush1.bf16.msra.mxu0 %v3404_v4  ;;  %261 = vmatpush1.bf16.msra.mxu1 %v3405_v5  ;;  %v3408_v7 = vld [vmem:[#allocation5 + $0x44] ss:$28 sps:$4 sm:$0xff]   ;;  %v3412_v12 = vld [vmem:[#allocation5 + $0x18] ss:$28 sps:$4 sm:$0xff]   ;;  %v3414_v15 = vld [vmem:[#allocation5 + $0x10] ss:$28 sps:$4 sm:$0xff]  }
  0x51   :  { %221 = vmatprep.subr.bf16.mxu0 %v3406_v6  ;;  %v3411_v9 = vld [vmem:[#allocation5 + $0x40] ss:$28 sps:$4 sm:$0xff]   ;;  %262 = vmatprep.subr.bf16.mxu1 %v3408_v7  ;;  %v3416_v13 = vld [vmem:[#allocation5 + $0x14] ss:$28 sps:$4 sm:$0xff]   ;;  %v3419_v16 = vld [vmem:[#allocation5 + $0x4c] ss:$28 sps:$4 sm:$0xff]   ;;  %v108_v6 = vlaneseq }
  0x52   :  { %v3413_v17 = vld [vmem:[#allocation5 + $0x50] ss:$28 sps:$4 sm:$0xff]   ;;  %vm3990_vm1 = vmmov 0   ;;  %v3417_v18 = vld [vmem:[#allocation5 + $0x48] ss:$28 sps:$4 sm:$0xff]   ;;  %vm2952_vm2 = vcmask 7168  }
  0x53   :  { %v3422_v19 = vld [vmem:[#allocation7 + $0x4] ss:$16 sps:$4 sm:$0xff]   ;;  %v3420_v20 = vld [vmem:[#allocation7] ss:$16 sps:$4 sm:$0xff]   ;;  %v3500_v5 = vld [vmem:[#allocation7 + $0xc] ss:$16 sps:$4 sm:$0xff]  }
  0x54   :  { %222 = vmatpush1.bf16.msra.mxu0 %v3410_v8  ;;  %263 = vmatpush1.bf16.msra.mxu1 %v3411_v9  ;;  %v3425_v21 = vld [vmem:[#allocation7 + $0x24] ss:$16 sps:$4 sm:$0xff]   ;;  %v3423_v22 = vld [vmem:[#allocation7 + $0x20] ss:$16 sps:$4 sm:$0xff]   ;;  %v4100_v7 = vshrl.u32 %v108_v6, 7 }
  0x55   :  { %3347 = vmatprep.subr.bf16.mxu1 %v3989_v14  ;;  %301 = vmatprep.subr.bf16.mxu0 %v3416_v13  ;;  %v3428_v23 = vld [vmem:[#allocation7 + $0x44] ss:$16 sps:$4 sm:$0xff]   ;;  %v3450_v24 = vld [vmem:[#allocation7 + $0x600] ss:$16 sps:$4 sm:$0xff]   ;;  %v3528_v6 = vld [vmem:[#allocation7 + $0xa8] ss:$16 sps:$4 sm:$0xff]  }
  0x56   :  { %v3452_v25 = vld [vmem:[#allocation7 + $0x604] ss:$16 sps:$4 sm:$0xff]   ;;  %v3426_v26 = vld [vmem:[#allocation7 + $0x40] ss:$16 sps:$4 sm:$0xff]   ;;  %v4103_v8 = vsub.s32 0, %v4100_v7  ;;  %v4106_v9 = vsub.s32 1, %v4100_v7 }
  0x57   :  { %2975 = vmatmul.mubr.msk.bf16.vlgmr.msra.gmra.mrb[0].mxu0 %vm215_vm0, %v89_v11  ;;  %2976 = vmatmul.mubr.msk.bf16.vlgmr.msra.gmra.mrb[0].mxu1 %vm215_vm0, %v89_v11  ;;  %v3431_v27 = vld [vmem:[#allocation7 + $0x64] ss:$16 sps:$4 sm:$0xff]   ;;  %v3456_v28 = vld [vmem:[#allocation7 + $0x620] ss:$16 sps:$4 sm:$0xff]   ;;  %v122_v10 = vsub.s32 3, %v4100_v7 }
  0x58   :  { %3348 = vmatpush3.bf16.msra.mxu1 %v3412_v12  ;;  %3351 = vmatprep.mubr.msk.bf16.mxu1 %vm3990_vm1, %v3989_v14  ;;  %v3458_v29 = vld [vmem:[#allocation7 + $0x624] ss:$16 sps:$4 sm:$0xff]   ;;  %v3429_v30 = vld [vmem:[#allocation7 + $0x60] ss:$16 sps:$4 sm:$0xff]  }
  0x59   :  { %3349 = vmatprep.subr.bf16.mxu1 %v3989_v14  ;;  %302 = vmatpush1.bf16.msra.mxu0 %v3414_v15  ;;  %v3434_v31 = vld [vmem:[#allocation7 + $0x84] ss:$16 sps:$4 sm:$0xff]   ;;  %v3462_v33 = vld [vmem:[#allocation7 + $0x640] ss:$16 sps:$4 sm:$0xff]  }
  0x5a   :  { %303 = vmatprep.subr.bf16.mxu0 %v3419_v16  ;;  %333 = vmatprep.mubr.bf16.mxu0 %v3988_v1  ;;  %v3464_v32 = vld [vmem:[#allocation7 + $0x644] ss:$16 sps:$4 sm:$0xff]   ;;  %v3432_v35 = vld [vmem:[#allocation7 + $0x80] ss:$16 sps:$4 sm:$0xff]  }
  0x5b   :  { %v3470_v34 = vld [vmem:[#allocation7 + $0x664] ss:$16 sps:$4 sm:$0xff]   ;;  %v3435_v37 = vld [vmem:[#allocation7 + $0xa0] ss:$16 sps:$4 sm:$0xff]  }
  0x5c   :  { %3350 = vmatpush3.bf16.msra.mxu1 %v3413_v17  ;;  %v3437_v36 = vld [vmem:[#allocation7 + $0xa4] ss:$16 sps:$4 sm:$0xff]   ;;  %v3468_v38 = vld [vmem:[#allocation7 + $0x660] ss:$16 sps:$4 sm:$0xff]  }
  0x5d   :  { %304 = vmatpush1.bf16.msra.mxu0 %v3417_v18  ;;  %1885 = vmatprep.subr.bf16.mxu1 %v3452_v25  ;;  %v3476_v39 = vld [vmem:[#allocation7 + $0x684] ss:$16 sps:$4 sm:$0xff]   ;;  %v3474_v41 = vld [vmem:[#allocation7 + $0x680] ss:$16 sps:$4 sm:$0xff]  }
  0x5e   :  { %1762 = vmatprep.subr.bf16.mxu0 %v3422_v19  ;;  %v3440_v40 = vld [vmem:[#allocation7 + $0xc4] ss:$16 sps:$4 sm:$0xff]   ;;  %v3438_v42 = vld [vmem:[#allocation7 + $0xc0] ss:$16 sps:$4 sm:$0xff]  }
  0x5f   :  { %3352 = vmatmul.mubr.msk.bf16.vlgmr.msra.gmra.mrb[4].mxu1 %vm215_vm0, %v89_v11  ;;  %v3443_v43 = vld [vmem:[#allocation7 + $0xe4] ss:$16 sps:$4 sm:$0xff]   ;;  %v3441_v44 = vld [vmem:[#allocation7 + $0xe0] ss:$16 sps:$4 sm:$0xff]  }
  0x60   :  { %2977 = vmatmul.mubr.msk.bf16.vlgmr.msra.gmra.mrb[4].mxu0 %vm215_vm0, %v89_v11  ;;  %1917 = vmatprep.mubr.bf16.mxu1 %v3988_v1  ;;  %v3446_v45 = vld [vmem:[#allocation7 + $0x104] ss:$16 sps:$4 sm:$0xff]   ;;  %v3444_v46 = vld [vmem:[#allocation7 + $0x100] ss:$16 sps:$4 sm:$0xff]  }
  0x61   :  { %1763 = vmatpush1.bf16.msra.mxu0 %v3420_v20  ;;  %1886 = vmatpush1.bf16.msra.mxu1 %v3450_v24  ;;  %v3449_v47 = vld [vmem:[#allocation7 + $0x124] ss:$16 sps:$4 sm:$0xff]   ;;  %v3447_v48 = vld [vmem:[#allocation7 + $0x120] ss:$16 sps:$4 sm:$0xff]   ;;  %v134_v20 = vsub.s32 6, %v4100_v7 }
  0x62   :  { %1764 = vmatprep.subr.bf16.mxu0 %v3425_v21  ;;  %1887 = vmatprep.subr.bf16.mxu1 %v3458_v29  ;;  %v3455_v49 = vld [vmem:[#allocation7 + $0x144] ss:$16 sps:$4 sm:$0xff]   ;;  %v3453_v50 = vld [vmem:[#allocation7 + $0x140] ss:$16 sps:$4 sm:$0xff]  }
  0x63   :  { %v3461_v51 = vld [vmem:[#allocation7 + $0x164] ss:$16 sps:$4 sm:$0xff]   ;;  %v3459_v52 = vld [vmem:[#allocation7 + $0x160] ss:$16 sps:$4 sm:$0xff]  }
  0x64   :  { %v3467_v53 = vld [vmem:[#allocation7 + $0x184] ss:$16 sps:$4 sm:$0xff]   ;;  %v3465_v54 = vld [vmem:[#allocation7 + $0x180] ss:$16 sps:$4 sm:$0xff]  }
  0x65   :  { %1765 = vmatpush1.bf16.msra.mxu0 %v3423_v22  ;;  %1888 = vmatpush1.bf16.msra.mxu1 %v3456_v28  ;;  %v3473_v55 = vld [vmem:[#allocation7 + $0x1a4] ss:$16 sps:$4 sm:$0xff]   ;;  %v3471_v56 = vld [vmem:[#allocation7 + $0x1a0] ss:$16 sps:$4 sm:$0xff]  }
  0x66   :  { %1766 = vmatprep.subr.bf16.mxu0 %v3428_v23  ;;  %1889 = vmatprep.subr.bf16.mxu1 %v3464_v32  ;;  %v3479_v57 = vld [vmem:[#allocation7 + $0x1c4] ss:$16 sps:$4 sm:$0xff]   ;;  %v3477_v58 = vld [vmem:[#allocation7 + $0x1c0] ss:$16 sps:$4 sm:$0xff]  }
  0x67   :  { %v3482_v59 = vld [vmem:[#allocation7 + $0x6a4] ss:$16 sps:$4 sm:$0xff]   ;;  %v3480_v60 = vld [vmem:[#allocation7 + $0x6a0] ss:$16 sps:$4 sm:$0xff]  }
  0x68   :  { %v3485_v61 = vld [vmem:[#allocation7 + $0x1e4] ss:$16 sps:$4 sm:$0xff]   ;;  %v3483_v62 = vld [vmem:[#allocation7 + $0x1e0] ss:$16 sps:$4 sm:$0xff]  }
  0x69   :  { %1767 = vmatpush1.bf16.msra.mxu0 %v3426_v26  ;;  %1890 = vmatpush1.bf16.msra.mxu1 %v3462_v33  ;;  %v3488_v63 = vld [vmem:[#allocation7 + $0x6c4] ss:$16 sps:$4 sm:$0xff]   ;;  %v3486_v0 = vld [vmem:[#allocation7 + $0x6c0] ss:$16 sps:$4 sm:$0xff]  }
  0x6a   :  { %1768 = vmatprep.subr.bf16.mxu0 %v3431_v27  ;;  %1891 = vmatprep.subr.bf16.mxu1 %v3470_v34  ;;  %v3491_v2 = vld [vmem:[#allocation7 + $0x204] ss:$16 sps:$4 sm:$0xff]   ;;  %v3492_v4 = vld [vmem:[#allocation7 + $0x6e0] ss:$16 sps:$4 sm:$0xff]  }
  0x6b   :  { %v3494_v3 = vld [vmem:[#allocation7 + $0x6e4] ss:$16 sps:$4 sm:$0xff]   ;;  %v3489_v33 = vld [vmem:[#allocation7 + $0x200] ss:$16 sps:$4 sm:$0xff]  }
  0x6c   :  { %v4112_v11 = vld [vmem:[%s4197_s2] sm:$0xff] }
  0x6d   :  { %1769 = vmatpush1.bf16.msra.mxu0 %v3429_v30  ;;  %1892 = vmatpush1.bf16.msra.mxu1 %v3468_v38  ;;  %v111_v12 = vrot.slane %v4112_v11, %v4103_v8  ;;  %v115_v13 = vrot.slane %v4112_v11, %v4106_v9  ;;  %v123_v14 = vrot.slane %v4112_v11, %v122_v10  ;;  %v3497_v34 = vld [vmem:[#allocation7 + $0x224] ss:$16 sps:$4 sm:$0xff]  }
  0x6e   :  { %1770 = vmatprep.subr.bf16.mxu0 %v3434_v31  ;;  %1893 = vmatprep.subr.bf16.mxu1 %v3476_v39  ;;  %v135_v31 = vrot.slane %v4112_v11, %v134_v20  ;;  %v3540_v20 = vld [vmem:[#allocation7 + $0xe8] ss:$16 sps:$4 sm:$0xff]  }
  0x71   :  { %1771 = vmatpush1.bf16.msra.mxu0 %v3432_v35  ;;  %1894 = vmatpush1.bf16.msra.mxu1 %v3474_v41  ;;  %v3495_v41 = vld [vmem:[#allocation7 + $0x220] ss:$16 sps:$4 sm:$0xff]  }
  0x72   :  { %1772 = vmatprep.subr.bf16.mxu0 %v3437_v36  ;;  %1895 = vmatprep.subr.bf16.mxu1 %v3482_v59  ;;  %v3513_v59 = vld [vmem:[#allocation7 + $0x280] ss:$16 sps:$4 sm:$0xff]  }
  0x75   :  { %1773 = vmatpush1.bf16.msra.mxu0 %v3435_v37  ;;  %1896 = vmatpush1.bf16.msra.mxu1 %v3480_v60  ;;  %v3521_v60 = vld [vmem:[#allocation7 + $0x2a4] ss:$16 sps:$4 sm:$0xff]  }
  0x76   :  { %1774 = vmatprep.subr.bf16.mxu0 %v3440_v40  ;;  %1897 = vmatprep.subr.bf16.mxu1 %v3488_v63  ;;  %v3519_v63 = vld [vmem:[#allocation7 + $0x2a0] ss:$16 sps:$4 sm:$0xff]  }
  0x79   :  { %1775 = vmatpush1.bf16.msra.mxu0 %v3438_v42  ;;  %1898 = vmatpush1.bf16.msra.mxu1 %v3486_v0  ;;  %v3527_v0 = vld [vmem:[#allocation7 + $0x2c4] ss:$16 sps:$4 sm:$0xff]  }
  0x7a   :  { %1776 = vmatprep.subr.bf16.mxu0 %v3443_v43  ;;  %1899 = vmatprep.subr.bf16.mxu1 %v3494_v3  ;;  %v3530_v3 = vld [vmem:[#allocation7 + $0xac] ss:$16 sps:$4 sm:$0xff]  }
  0x7d   :  { %1777 = vmatpush1.bf16.msra.mxu0 %v3441_v44  ;;  %1900 = vmatpush1.bf16.msra.mxu1 %v3492_v4  ;;  %v3525_v4 = vld [vmem:[#allocation7 + $0x2c0] ss:$16 sps:$4 sm:$0xff]  }
  0x7e   :  { %1778 = vmatprep.subr.bf16.mxu0 %v3446_v45  ;;  %1926 = vmatprep.subr.bf16.mxu1 %v3500_v5  ;;  %v3503_v45 = vld [vmem:[#allocation7 + $0x244] ss:$16 sps:$4 sm:$0xff]  }
  0x7f   :  { %v3533_v5 = vld [vmem:[#allocation7 + $0x2e4] ss:$16 sps:$4 sm:$0xff]  }
  0x81   :  { %1779 = vmatpush1.bf16.msra.mxu0 %v3444_v46 }
  0x82   :  { %1780 = vmatprep.subr.bf16.mxu0 %v3449_v47  ;;  %v3498_v47 = vld [vmem:[#allocation7 + $0x8] ss:$16 sps:$4 sm:$0xff]  }
  0x85   :  { %1781 = vmatpush1.bf16.msra.mxu0 %v3447_v48 }
  0x86   :  { %1782 = vmatprep.subr.bf16.mxu0 %v3455_v49 }
  0x89   :  { %1783 = vmatpush1.bf16.msra.mxu0 %v3453_v50  ;;  %v3506_v50 = vld [vmem:[#allocation7 + $0x2c] ss:$16 sps:$4 sm:$0xff]  }
  0x8a   :  { %1784 = vmatprep.subr.bf16.mxu0 %v3461_v51  ;;  %v3501_v51 = vld [vmem:[#allocation7 + $0x240] ss:$16 sps:$4 sm:$0xff]  }
  0x8d   :  { %1785 = vmatpush1.bf16.msra.mxu0 %v3459_v52  ;;  %v3509_v52 = vld [vmem:[#allocation7 + $0x264] ss:$16 sps:$4 sm:$0xff]  }
  0x8e   :  { %1786 = vmatprep.subr.bf16.mxu0 %v3467_v53  ;;  %v3504_v53 = vld [vmem:[#allocation7 + $0x28] ss:$16 sps:$4 sm:$0xff]  }
  0x91   :  { %1787 = vmatpush1.bf16.msra.mxu0 %v3465_v54  ;;  %v3512_v54 = vld [vmem:[#allocation7 + $0x4c] ss:$16 sps:$4 sm:$0xff]  }
  0x92   :  { %1788 = vmatprep.subr.bf16.mxu0 %v3473_v55  ;;  %v3507_v55 = vld [vmem:[#allocation7 + $0x260] ss:$16 sps:$4 sm:$0xff]  }
  0x95   :  { %1789 = vmatpush1.bf16.msra.mxu0 %v3471_v56  ;;  %v3515_v56 = vld [vmem:[#allocation7 + $0x284] ss:$16 sps:$4 sm:$0xff]  }
  0x96   :  { %1790 = vmatprep.subr.bf16.mxu0 %v3479_v57  ;;  %v3510_v57 = vld [vmem:[#allocation7 + $0x48] ss:$16 sps:$4 sm:$0xff]  }
  0x99   :  { %1791 = vmatpush1.bf16.msra.mxu0 %v3477_v58  ;;  %v3518_v58 = vld [vmem:[#allocation7 + $0x6c] ss:$16 sps:$4 sm:$0xff]  }
  0x9a   :  { %1792 = vmatprep.subr.bf16.mxu0 %v3485_v61  ;;  %v3516_v61 = vld [vmem:[#allocation7 + $0x68] ss:$16 sps:$4 sm:$0xff]  }
  0x9d   :  { %1793 = vmatpush1.bf16.msra.mxu0 %v3483_v62  ;;  %v3524_v62 = vld [vmem:[#allocation7 + $0x8c] ss:$16 sps:$4 sm:$0xff]  }
  0x9e   :  { %1803 = vmatprep.subr.bf16.mxu0 %v3491_v2  ;;  %v3522_v2 = vld [vmem:[#allocation7 + $0x88] ss:$16 sps:$4 sm:$0xff]  }
 0x12a   :  { %v253_v15 = vpop.f32.mrb[0].mxu0  ;;  %v4121_v16 = vpop.f32.mrb[0].mxu1 }
 0x12b   :  { %v254_v17 = vadd.f32 %v253_v15, %v111_v12  ;;  %v255_v18 = vpop.f32.mrb[1].mxu0  ;;  %v296_v19 = vpop.f32.mrb[1].mxu1  ;;  %v3536_v12 = vld [vmem:[#allocation7 + $0xcc] ss:$16 sps:$4 sm:$0xff]   ;;  %v3534_v15 = vld [vmem:[#allocation7 + $0xc8] ss:$16 sps:$4 sm:$0xff]  }
 0x12c   :  { %v256_v21 = vadd.f32 %v255_v18, %v115_v13  ;;  %v297_v22 = vadd.f32 %v296_v19, %v123_v14  ;;  %v298_v23 = vpop.f32.mrb[2].mxu1  ;;  %v257_v24 = vpop.f32.mrb[2].mxu0  ;;  %v3531_v13 = vld [vmem:[#allocation7 + $0x2e0] ss:$16 sps:$4 sm:$0xff]   ;;  %v3539_v14 = vld [vmem:[#allocation7 + $0x304] ss:$16 sps:$4 sm:$0xff]  }
 0x12d   :  { %v382_v25 = vmax.f32 %v254_v17, 0.0  ;;  %v299_v26 = vpop.f32.mrb[3].mxu1  ;;  %v258_v27 = vpop.f32.mrb[3].mxu0  ;;  %v3542_v17 = vld [vmem:[#allocation7 + $0xec] ss:$16 sps:$4 sm:$0xff]  }
 0x12e   :  { %v383_v28 = vmax.f32 %v256_v21, 0.0  ;;  %v385_v29 = vmax.f32 %v297_v22, 0.0  ;;  %v3537_v18 = vld [vmem:[#allocation7 + $0x300] ss:$16 sps:$4 sm:$0xff]   ;;  %v3545_v19 = vld [vmem:[#allocation7 + $0x324] ss:$16 sps:$4 sm:$0xff]  }
 0x12f   :  { %v4124_v30 = vpack.c.bf16 %v382_v25, %v382_v25  ;;  %v3548_v21 = vld [vmem:[#allocation7 + $0x10c] ss:$16 sps:$4 sm:$0xff]   ;;  %v3543_v22 = vld [vmem:[#allocation7 + $0x320] ss:$16 sps:$4 sm:$0xff]   ;;  %v3551_v23 = vld [vmem:[#allocation7 + $0x344] ss:$16 sps:$4 sm:$0xff]  }
 0x130   :  { %v390_v32 = vpack.c.bf16 %v383_v28, %v383_v28  ;;  %v4127_v35 = vpack.c.bf16 %v385_v29, %v385_v29  ;;  %v3546_v24 = vld [vmem:[#allocation7 + $0x108] ss:$16 sps:$4 sm:$0xff]   ;;  %v3554_v25 = vld [vmem:[#allocation7 + $0x12c] ss:$16 sps:$4 sm:$0xff]   ;;  %v3549_v26 = vld [vmem:[#allocation7 + $0x340] ss:$16 sps:$4 sm:$0xff]  }
 0x131   :  { %v3557_v27 = vld [vmem:[#allocation7 + $0x364] ss:$16 sps:$4 sm:$0xff]   ;;  %v3552_v28 = vld [vmem:[#allocation7 + $0x128] ss:$16 sps:$4 sm:$0xff]   ;;  %v3560_v29 = vld [vmem:[#allocation7 + $0x14c] ss:$16 sps:$4 sm:$0xff]  }
 0x132   :  { %v376_v36 = vpop.f32.mrb[4].mxu1  ;;  %1794 = vmatprep.mubr.bf16.mxu0 %v390_v32 }
 0x133   :  { %v377_v37 = vadd.f32 %v376_v36, %v135_v31  ;;  %v3353_v38 = vpop.f32.mrb[5].mxu1  ;;  %1795 = vmatmul.mubr.bf16.vlgmr.msra.gmra.mrb[8].mxu0 %v4124_v30  ;;  %v4130_v39 = vpop.f32.mrb[4].mxu0  ;;  %v3555_v31 = vld [vmem:[#allocation7 + $0x360] ss:$16 sps:$4 sm:$0xff]  }
 0x134   :  { %1804 = vmatpush1.bf16.msra.mxu0 %v3489_v33  ;;  %v379_v40 = vpop.f32.mrb[6].mxu1  ;;  %1835 = vmatprep.mubr.bf16.mxu0 %v4127_v35  ;;  %v4133_v42 = vpop.f32.mrb[5].mxu0  ;;  %v3558_v33 = vld [vmem:[#allocation7 + $0x148] ss:$16 sps:$4 sm:$0xff]   ;;  %v3561_v36 = vld [vmem:[#allocation7 + $0x380] ss:$16 sps:$4 sm:$0xff]  }
 0x135   :  { %v388_v43 = vmax.f32 %v377_v37, 0.0  ;;  %v3354_v44 = vpop.f32.mrb[7].mxu1  ;;  %1805 = vmatprep.subr.bf16.mxu0 %v3497_v34  ;;  %v339_v46 = vpop.f32.mrb[6].mxu0  ;;  %v3566_v34 = vld [vmem:[#allocation7 + $0x16c] ss:$16 sps:$4 sm:$0xff]   ;;  %v130_v37 = vsub.s32 5, %v4100_v7 }
 0x136   :  { %v340_v48 = vpop.f32.mrb[7].mxu0  ;;  %v4140_v38 = vsub.s32 2, %v4100_v7  ;;  %v3569_v40 = vld [vmem:[#allocation7 + $0x3a4] ss:$16 sps:$4 sm:$0xff]   ;;  %v3567_v44 = vld [vmem:[#allocation7 + $0x3a0] ss:$16 sps:$4 sm:$0xff]  }
 0x137   :  { %v4135_v49 = vpack.c.bf16 %v388_v43, %v388_v43  ;;  %v3572_v43 = vld [vmem:[#allocation7 + $0x18c] ss:$16 sps:$4 sm:$0xff]   ;;  %v3570_v48 = vld [vmem:[#allocation7 + $0x188] ss:$16 sps:$4 sm:$0xff]  }
 0x138   :  { %1806 = vmatpush1.bf16.msra.mxu0 %v3495_v41  ;;  %v3564_v41 = vld [vmem:[#allocation7 + $0x168] ss:$16 sps:$4 sm:$0xff]   ;;  %v119_v46 = vrot.slane %v4112_v11, %v4140_v38 }
 0x139   :  { %1918 = vmatmul.mubr.bf16.vlgmr.msra.gmra.mrb[8].mxu1 %v4135_v49  ;;  %1807 = vmatprep.subr.bf16.mxu0 %v3503_v45  ;;  %v131_v45 = vrot.slane %v4112_v11, %v130_v37  ;;  %v3638_v37 = vld [vmem:[#allocation7 + $0x2ec] ss:$16 sps:$4 sm:$0xff]  }
 0x13a   :  { %1927 = vmatpush1.bf16.msra.mxu1 %v3498_v47  ;;  %1958 = vmatprep.mubr.bf16.mxu1 %v390_v32  ;;  %v3563_v32 = vld [vmem:[#allocation7 + $0x384] ss:$16 sps:$4 sm:$0xff]  }
 0x13b   :  { %1928 = vmatprep.subr.bf16.mxu1 %v3506_v50  ;;  %v3575_v47 = vld [vmem:[#allocation7 + $0x3c4] ss:$16 sps:$4 sm:$0xff]   ;;  %v3578_v50 = vld [vmem:[#allocation7 + $0x1ac] ss:$16 sps:$4 sm:$0xff]  }
 0x13c   :  { %1808 = vmatpush1.bf16.msra.mxu0 %v3501_v51  ;;  %v3573_v51 = vld [vmem:[#allocation7 + $0x3c0] ss:$16 sps:$4 sm:$0xff]  }
 0x13d   :  { %1809 = vmatprep.subr.bf16.mxu0 %v3509_v52  ;;  %v338_v52 = vadd.f32 %v4133_v42, %v131_v45  ;;  %v3585_v42 = vld [vmem:[#allocation7 + $0x400] ss:$16 sps:$4 sm:$0xff]  }
 0x13e   :  { %1929 = vmatpush1.bf16.msra.mxu1 %v3504_v53  ;;  %v295_v53 = vadd.f32 %v4121_v16, %v119_v46  ;;  %v3639_v45 = vld [vmem:[#allocation7 + $0x520] ss:$16 sps:$4 sm:$0xff]   ;;  %v3647_v46 = vld [vmem:[#allocation7 + $0x544] ss:$16 sps:$4 sm:$0xff]  }
 0x13f   :  { %1930 = vmatprep.subr.bf16.mxu1 %v3512_v54  ;;  %v3581_v54 = vld [vmem:[#allocation7 + $0x3e4] ss:$16 sps:$4 sm:$0xff]  }
 0x140   :  { %1810 = vmatpush1.bf16.msra.mxu0 %v3507_v55  ;;  %v3576_v55 = vld [vmem:[#allocation7 + $0x1a8] ss:$16 sps:$4 sm:$0xff]  }
 0x141   :  { %1811 = vmatprep.subr.bf16.mxu0 %v3515_v56  ;;  %v3584_v56 = vld [vmem:[#allocation7 + $0x1cc] ss:$16 sps:$4 sm:$0xff]  }
 0x142   :  { %1931 = vmatpush1.bf16.msra.mxu1 %v3510_v57  ;;  %v3579_v57 = vld [vmem:[#allocation7 + $0x3e0] ss:$16 sps:$4 sm:$0xff]  }
 0x143   :  { %1932 = vmatprep.subr.bf16.mxu1 %v3518_v58  ;;  %v387_v58 = vmax.f32 %v338_v52, 0.0  ;;  %v3648_v52 = vld [vmem:[#allocation7 + $0x328] ss:$16 sps:$4 sm:$0xff]  }
 0x144   :  { %1812 = vmatpush1.bf16.msra.mxu0 %v3513_v59  ;;  %v384_v59 = vmax.f32 %v295_v53, 0.0  ;;  %v3656_v53 = vld [vmem:[#allocation7 + $0x34c] ss:$16 sps:$4 sm:$0xff]  }
 0x145   :  { %1813 = vmatprep.subr.bf16.mxu0 %v3521_v60  ;;  %v3587_v60 = vld [vmem:[#allocation7 + $0x404] ss:$16 sps:$4 sm:$0xff]  }
 0x146   :  { %1933 = vmatpush1.bf16.msra.mxu1 %v3516_v61  ;;  %v3582_v61 = vld [vmem:[#allocation7 + $0x1c8] ss:$16 sps:$4 sm:$0xff]   ;;  %v4149_v16 = vpack.c.bf16 %v384_v59, %v384_v59  ;;  %v3657_v59 = vld [vmem:[#allocation7 + $0x580] ss:$16 sps:$4 sm:$0xff]  }
 0x147   :  { %1934 = vmatprep.subr.bf16.mxu1 %v3524_v62  ;;  %v3590_v62 = vld [vmem:[#allocation7 + $0x1ec] ss:$16 sps:$4 sm:$0xff]  }
 0x148   :  { %1814 = vmatpush1.bf16.msra.mxu0 %v3519_v63  ;;  %v4147_v63 = vpack.c.bf16 %v387_v58, %v387_v58  ;;  %v126_v58 = vsub.s32 4, %v4100_v7 }
 0x149   :  { %1815 = vmatprep.subr.bf16.mxu0 %v3527_v0  ;;  %v3593_v0 = vld [vmem:[#allocation7 + $0x424] ss:$16 sps:$4 sm:$0xff]  }
 0x14a   :  { %1935 = vmatpush1.bf16.msra.mxu1 %v3522_v2  ;;  %v3588_v2 = vld [vmem:[#allocation7 + $0x1e8] ss:$16 sps:$4 sm:$0xff]  }
 0x14b   :  { %1936 = vmatprep.subr.bf16.mxu1 %v3530_v3  ;;  %v3596_v3 = vld [vmem:[#allocation7 + $0x20c] ss:$16 sps:$4 sm:$0xff]  }
 0x14c   :  { %1816 = vmatpush1.bf16.msra.mxu0 %v3525_v4  ;;  %v3591_v4 = vld [vmem:[#allocation7 + $0x420] ss:$16 sps:$4 sm:$0xff]  }
 0x14d   :  { %1817 = vmatprep.subr.bf16.mxu0 %v3533_v5  ;;  %v3599_v5 = vld [vmem:[#allocation7 + $0x444] ss:$16 sps:$4 sm:$0xff]  }
 0x14e   :  { %1937 = vmatpush1.bf16.msra.mxu1 %v3528_v6  ;;  %v3594_v6 = vld [vmem:[#allocation7 + $0x208] ss:$16 sps:$4 sm:$0xff]  }
 0x14f   :  { %1938 = vmatprep.subr.bf16.mxu1 %v3536_v12  ;;  %v3602_v12 = vld [vmem:[#allocation7 + $0x22c] ss:$16 sps:$4 sm:$0xff]  }
 0x150   :  { %1818 = vmatpush1.bf16.msra.mxu0 %v3531_v13  ;;  %v3597_v13 = vld [vmem:[#allocation7 + $0x440] ss:$16 sps:$4 sm:$0xff]  }
 0x151   :  { %1819 = vmatprep.subr.bf16.mxu0 %v3539_v14  ;;  %v3605_v14 = vld [vmem:[#allocation7 + $0x464] ss:$16 sps:$4 sm:$0xff]  }
 0x152   :  { %1939 = vmatpush1.bf16.msra.mxu1 %v3534_v15  ;;  %v3600_v15 = vld [vmem:[#allocation7 + $0x228] ss:$16 sps:$4 sm:$0xff]  }
 0x153   :  { %1940 = vmatprep.subr.bf16.mxu1 %v3542_v17  ;;  %v3608_v17 = vld [vmem:[#allocation7 + $0x24c] ss:$16 sps:$4 sm:$0xff]  }
 0x154   :  { %1820 = vmatpush1.bf16.msra.mxu0 %v3537_v18  ;;  %v3603_v18 = vld [vmem:[#allocation7 + $0x460] ss:$16 sps:$4 sm:$0xff]  }
 0x155   :  { %1821 = vmatprep.subr.bf16.mxu0 %v3545_v19  ;;  %v3611_v19 = vld [vmem:[#allocation7 + $0x484] ss:$16 sps:$4 sm:$0xff]  }
 0x156   :  { %1941 = vmatpush1.bf16.msra.mxu1 %v3540_v20  ;;  %v3606_v20 = vld [vmem:[#allocation7 + $0x248] ss:$16 sps:$4 sm:$0xff]  }
 0x157   :  { %1942 = vmatprep.subr.bf16.mxu1 %v3548_v21  ;;  %v3614_v21 = vld [vmem:[#allocation7 + $0x26c] ss:$16 sps:$4 sm:$0xff]  }
 0x158   :  { %1822 = vmatpush1.bf16.msra.mxu0 %v3543_v22  ;;  %v3609_v22 = vld [vmem:[#allocation7 + $0x480] ss:$16 sps:$4 sm:$0xff]  }
 0x159   :  { %1823 = vmatprep.subr.bf16.mxu0 %v3551_v23  ;;  %v3612_v23 = vld [vmem:[#allocation7 + $0x268] ss:$16 sps:$4 sm:$0xff]  }
 0x15a   :  { %1943 = vmatpush1.bf16.msra.mxu1 %v3546_v24  ;;  %v3620_v24 = vld [vmem:[#allocation7 + $0x28c] ss:$16 sps:$4 sm:$0xff]  }
 0x15b   :  { %1944 = vmatprep.subr.bf16.mxu1 %v3554_v25  ;;  %v3623_v25 = vld [vmem:[#allocation7 + $0x4c4] ss:$16 sps:$4 sm:$0xff]  }
 0x15c   :  { %1824 = vmatpush1.bf16.msra.mxu0 %v3549_v26  ;;  %v3618_v26 = vld [vmem:[#allocation7 + $0x288] ss:$16 sps:$4 sm:$0xff]  }
 0x15d   :  { %1825 = vmatprep.subr.bf16.mxu0 %v3557_v27  ;;  %v3626_v27 = vld [vmem:[#allocation7 + $0x2ac] ss:$16 sps:$4 sm:$0xff]  }
 0x15e   :  { %1945 = vmatpush1.bf16.msra.mxu1 %v3552_v28  ;;  %v3621_v28 = vld [vmem:[#allocation7 + $0x4c0] ss:$16 sps:$4 sm:$0xff]  }
 0x15f   :  { %1946 = vmatprep.subr.bf16.mxu1 %v3560_v29  ;;  %v3629_v29 = vld [vmem:[#allocation7 + $0x4e4] ss:$16 sps:$4 sm:$0xff]  }
 0x160   :  { %1826 = vmatpush1.bf16.msra.mxu0 %v3555_v31  ;;  %v3624_v31 = vld [vmem:[#allocation7 + $0x2a8] ss:$16 sps:$4 sm:$0xff]  }
 0x161   :  { %1827 = vmatprep.subr.bf16.mxu0 %v3563_v32  ;;  %v3632_v32 = vld [vmem:[#allocation7 + $0x2cc] ss:$16 sps:$4 sm:$0xff]  }
 0x162   :  { %1947 = vmatpush1.bf16.msra.mxu1 %v3558_v33  ;;  %v3627_v33 = vld [vmem:[#allocation7 + $0x4e0] ss:$16 sps:$4 sm:$0xff]  }
 0x163   :  { %1948 = vmatprep.subr.bf16.mxu1 %v3566_v34  ;;  %v3635_v34 = vld [vmem:[#allocation7 + $0x504] ss:$16 sps:$4 sm:$0xff]  }
 0x164   :  { %1828 = vmatpush1.bf16.msra.mxu0 %v3561_v36  ;;  %v3630_v36 = vld [vmem:[#allocation7 + $0x2c8] ss:$16 sps:$4 sm:$0xff]  }
 0x165   :  { %1829 = vmatprep.subr.bf16.mxu0 %v3569_v40  ;;  %v3633_v40 = vld [vmem:[#allocation7 + $0x500] ss:$16 sps:$4 sm:$0xff]  }
 0x166   :  { %1949 = vmatpush1.bf16.msra.mxu1 %v3564_v41  ;;  %v3641_v41 = vld [vmem:[#allocation7 + $0x524] ss:$16 sps:$4 sm:$0xff]  }
 0x167   :  { %1950 = vmatprep.subr.bf16.mxu1 %v3572_v43  ;;  %v3636_v43 = vld [vmem:[#allocation7 + $0x2e8] ss:$16 sps:$4 sm:$0xff]  }
 0x168   :  { %1830 = vmatpush1.bf16.msra.mxu0 %v3567_v44  ;;  %v3644_v44 = vld [vmem:[#allocation7 + $0x30c] ss:$16 sps:$4 sm:$0xff]  }
 0x169   :  { %1831 = vmatprep.subr.bf16.mxu0 %v3575_v47  ;;  %v3642_v47 = vld [vmem:[#allocation7 + $0x308] ss:$16 sps:$4 sm:$0xff]  }
 0x16a   :  { %1951 = vmatpush1.bf16.msra.mxu1 %v3570_v48  ;;  %v3650_v48 = vld [vmem:[#allocation7 + $0x32c] ss:$16 sps:$4 sm:$0xff]  }
 0x16b   :  { %1952 = vmatprep.subr.bf16.mxu1 %v3578_v50  ;;  %v3645_v50 = vld [vmem:[#allocation7 + $0x540] ss:$16 sps:$4 sm:$0xff]  }
 0x16c   :  { %1832 = vmatpush1.bf16.msra.mxu0 %v3573_v51  ;;  %v3653_v51 = vld [vmem:[#allocation7 + $0x564] ss:$16 sps:$4 sm:$0xff]  }
 0x16d   :  { %1833 = vmatprep.subr.bf16.mxu0 %v3581_v54  ;;  %v3651_v54 = vld [vmem:[#allocation7 + $0x560] ss:$16 sps:$4 sm:$0xff]  }
 0x16e   :  { %1953 = vmatpush1.bf16.msra.mxu1 %v3576_v55  ;;  %v3659_v55 = vld [vmem:[#allocation7 + $0x584] ss:$16 sps:$4 sm:$0xff]  }
 0x16f   :  { %1954 = vmatprep.subr.bf16.mxu1 %v3584_v56  ;;  %v3654_v56 = vld [vmem:[#allocation7 + $0x348] ss:$16 sps:$4 sm:$0xff]  }
 0x170   :  { %1834 = vmatpush1.bf16.msra.mxu0 %v3579_v57  ;;  %v3662_v57 = vld [vmem:[#allocation7 + $0x36c] ss:$16 sps:$4 sm:$0xff]  }
 0x171   :  { %1844 = vmatprep.subr.bf16.mxu0 %v3587_v60  ;;  %v3665_v60 = vld [vmem:[#allocation7 + $0x5a4] ss:$16 sps:$4 sm:$0xff]  }
 0x172   :  { %1955 = vmatpush1.bf16.msra.mxu1 %v3582_v61  ;;  %v3660_v61 = vld [vmem:[#allocation7 + $0x368] ss:$16 sps:$4 sm:$0xff]  }
 0x173   :  { %1836 = vmatmul.mubr.bf16.vlgmr.msra.gmra.mrb[8].mxu0 %v4149_v16  ;;  %1956 = vmatprep.subr.bf16.mxu1 %v3590_v62  ;;  %v3668_v62 = vld [vmem:[#allocation7 + $0x38c] ss:$16 sps:$4 sm:$0xff]  }
 0x174   :  { %1845 = vmatpush1.bf16.msra.mxu0 %v3585_v42  ;;  %1876 = vmatprep.mubr.bf16.mxu0 %v4147_v63  ;;  %v127_v42 = vrot.slane %v4112_v11, %v126_v58  ;;  %v3675_v11 = vld [vmem:[#allocation7 + $0x5e0] ss:$16 sps:$4 sm:$0xff]   ;;  %v3785_v58 = vld [vmem:[#allocation8 + $0xd8] ss:$12 sps:$4 sm:$0xff]  }
 0x175   :  { %1846 = vmatprep.subr.bf16.mxu0 %v3593_v0  ;;  %v3663_v0 = vld [vmem:[#allocation7 + $0x5a0] ss:$16 sps:$4 sm:$0xff]  }
 0x176   :  { %1957 = vmatpush1.bf16.msra.mxu1 %v3588_v2  ;;  %v3671_v2 = vld [vmem:[#allocation7 + $0x5c4] ss:$16 sps:$4 sm:$0xff]  }
 0x177   :  { %1967 = vmatprep.subr.bf16.mxu1 %v3596_v3  ;;  %v3666_v3 = vld [vmem:[#allocation7 + $0x388] ss:$16 sps:$4 sm:$0xff]  }
 0x178   :  { %1847 = vmatpush1.bf16.msra.mxu0 %v3591_v4  ;;  %v336_v4 = vadd.f32 %v4130_v39, %v127_v42  ;;  %v3683_v39 = vld [vmem:[#allocation7 + $0x3ec] ss:$16 sps:$4 sm:$0xff]  }
 0x179   :  { %1959 = vmatmul.mubr.bf16.vlgmr.msra.gmra.mrb[12].mxu1 %v4124_v30  ;;  %1848 = vmatprep.subr.bf16.mxu0 %v3599_v5  ;;  %v3617_v30 = vld [vmem:[#allocation7 + $0x4a4] ss:$16 sps:$4 sm:$0xff]   ;;  %v3674_v5 = vld [vmem:[#allocation7 + $0x3ac] ss:$16 sps:$4 sm:$0xff]  }
 0x17a   :  { %1968 = vmatpush1.bf16.msra.mxu1 %v3594_v6  ;;  %1999 = vmatprep.mubr.bf16.mxu1 %v4127_v35  ;;  %v3615_v35 = vld [vmem:[#allocation7 + $0x4a0] ss:$16 sps:$4 sm:$0xff]   ;;  %v3797_v42 = vld [vmem:[#allocation8 + $0x10c] ss:$12 sps:$4 sm:$0xff]  }
 0x17b   :  { %1969 = vmatprep.subr.bf16.mxu1 %v3602_v12  ;;  %v3669_v6 = vld [vmem:[#allocation7 + $0x5c0] ss:$16 sps:$4 sm:$0xff]   ;;  %v3677_v12 = vld [vmem:[#allocation7 + $0x5e4] ss:$16 sps:$4 sm:$0xff]  }
 0x17c   :  { %1849 = vmatpush1.bf16.msra.mxu0 %v3597_v13  ;;  %v3672_v13 = vld [vmem:[#allocation7 + $0x3a8] ss:$16 sps:$4 sm:$0xff]  }
 0x17d   :  { %1850 = vmatprep.subr.bf16.mxu0 %v3605_v14  ;;  %v386_v14 = vmax.f32 %v336_v4, 0.0  ;;  %v3802_v4 = vld [vmem:[#allocation8 + $0x124] ss:$12 sps:$4 sm:$0xff]  }
 0x17e   :  { %1970 = vmatpush1.bf16.msra.mxu1 %v3600_v15  ;;  %v3680_v15 = vld [vmem:[#allocation7 + $0x3cc] ss:$16 sps:$4 sm:$0xff]  }
 0x17f   :  { %1971 = vmatprep.subr.bf16.mxu1 %v3608_v17  ;;  %v3758_v17 = vld [vmem:[#allocation8 + $0x4] ss:$12 sps:$4 sm:$0xff]  }
 0x180   :  { %1851 = vmatpush1.bf16.msra.mxu0 %v3603_v18  ;;  %v3678_v18 = vld [vmem:[#allocation7 + $0x3c8] ss:$16 sps:$4 sm:$0xff]  }
 0x181   :  { %1852 = vmatprep.subr.bf16.mxu0 %v3611_v19  ;;  %v4158_v19 = vpack.c.bf16 %v386_v14, %v386_v14  ;;  %v3717_v14 = vld [vmem:[#allocation7 + $0x568] ss:$16 sps:$4 sm:$0xff]  }
 0x182   :  { %1972 = vmatpush1.bf16.msra.mxu1 %v3606_v20  ;;  %v3756_v20 = vld [vmem:[#allocation8] ss:$12 sps:$4 sm:$0xff]  }
 0x183   :  { %1973 = vmatprep.subr.bf16.mxu1 %v3614_v21  ;;  %v3761_v21 = vld [vmem:[#allocation8 + $0x1c] ss:$12 sps:$4 sm:$0xff]  }
 0x184   :  { %1853 = vmatpush1.bf16.msra.mxu0 %v3609_v22  ;;  %v3681_v22 = vld [vmem:[#allocation7 + $0x3e8] ss:$16 sps:$4 sm:$0xff]  }
 0x185   :  { %1854 = vmatprep.subr.bf16.mxu0 %v3617_v30  ;;  %v3686_v30 = vld [vmem:[#allocation7 + $0x40c] ss:$16 sps:$4 sm:$0xff]  }
 0x186   :  { %1974 = vmatpush1.bf16.msra.mxu1 %v3612_v23  ;;  %v3759_v23 = vld [vmem:[#allocation8 + $0x18] ss:$12 sps:$4 sm:$0xff]  }
 0x187   :  { %1975 = vmatprep.subr.bf16.mxu1 %v3620_v24  ;;  %v3764_v24 = vld [vmem:[#allocation8 + $0x34] ss:$12 sps:$4 sm:$0xff]  }
 0x188   :  { %1855 = vmatpush1.bf16.msra.mxu0 %v3615_v35  ;;  %v3684_v35 = vld [vmem:[#allocation7 + $0x408] ss:$16 sps:$4 sm:$0xff]  }
 0x189   :  { %1856 = vmatprep.subr.bf16.mxu0 %v3623_v25  ;;  %v3689_v25 = vld [vmem:[#allocation7 + $0x42c] ss:$16 sps:$4 sm:$0xff]  }
 0x18a   :  { %1976 = vmatpush1.bf16.msra.mxu1 %v3618_v26  ;;  %v3762_v26 = vld [vmem:[#allocation8 + $0x30] ss:$12 sps:$4 sm:$0xff]  }
 0x18b   :  { %1977 = vmatprep.subr.bf16.mxu1 %v3626_v27  ;;  %v3767_v27 = vld [vmem:[#allocation8 + $0x4c] ss:$12 sps:$4 sm:$0xff]  }
 0x18c   :  { %1857 = vmatpush1.bf16.msra.mxu0 %v3621_v28  ;;  %v3687_v28 = vld [vmem:[#allocation7 + $0x428] ss:$16 sps:$4 sm:$0xff]  }
 0x18d   :  { %1858 = vmatprep.subr.bf16.mxu0 %v3629_v29  ;;  %v3692_v29 = vld [vmem:[#allocation7 + $0x44c] ss:$16 sps:$4 sm:$0xff]  }
 0x18e   :  { %1978 = vmatpush1.bf16.msra.mxu1 %v3624_v31  ;;  %v3765_v31 = vld [vmem:[#allocation8 + $0x48] ss:$12 sps:$4 sm:$0xff]  }
 0x18f   :  { %1979 = vmatprep.subr.bf16.mxu1 %v3632_v32  ;;  %v3770_v32 = vld [vmem:[#allocation8 + $0x64] ss:$12 sps:$4 sm:$0xff]  }
 0x190   :  { %1859 = vmatpush1.bf16.msra.mxu0 %v3627_v33  ;;  %v3690_v33 = vld [vmem:[#allocation7 + $0x448] ss:$16 sps:$4 sm:$0xff]  }
 0x191   :  { %1860 = vmatprep.subr.bf16.mxu0 %v3635_v34  ;;  %v3695_v34 = vld [vmem:[#allocation7 + $0x46c] ss:$16 sps:$4 sm:$0xff]  }
 0x192   :  { %1980 = vmatpush1.bf16.msra.mxu1 %v3630_v36  ;;  %v3768_v36 = vld [vmem:[#allocation8 + $0x60] ss:$12 sps:$4 sm:$0xff]  }
 0x193   :  { %1981 = vmatprep.subr.bf16.mxu1 %v3638_v37  ;;  %v3693_v37 = vld [vmem:[#allocation7 + $0x468] ss:$16 sps:$4 sm:$0xff]  }
 0x194   :  { %1861 = vmatpush1.bf16.msra.mxu0 %v3633_v40  ;;  %v3698_v40 = vld [vmem:[#allocation7 + $0x48c] ss:$16 sps:$4 sm:$0xff]  }
 0x195   :  { %1862 = vmatprep.subr.bf16.mxu0 %v3641_v41  ;;  %v3776_v41 = vld [vmem:[#allocation8 + $0x94] ss:$12 sps:$4 sm:$0xff]  }
 0x196   :  { %1982 = vmatpush1.bf16.msra.mxu1 %v3636_v43  ;;  %v3696_v43 = vld [vmem:[#allocation7 + $0x488] ss:$16 sps:$4 sm:$0xff]  }
 0x197   :  { %1983 = vmatprep.subr.bf16.mxu1 %v3644_v44  ;;  %v3701_v44 = vld [vmem:[#allocation7 + $0x4ac] ss:$16 sps:$4 sm:$0xff]  }
 0x198   :  { %1863 = vmatpush1.bf16.msra.mxu0 %v3639_v45  ;;  %v3774_v45 = vld [vmem:[#allocation8 + $0x90] ss:$12 sps:$4 sm:$0xff]  }
 0x199   :  { %1864 = vmatprep.subr.bf16.mxu0 %v3647_v46  ;;  %v3779_v46 = vld [vmem:[#allocation8 + $0xac] ss:$12 sps:$4 sm:$0xff]  }
 0x19a   :  { %1984 = vmatpush1.bf16.msra.mxu1 %v3642_v47  ;;  %v3699_v47 = vld [vmem:[#allocation7 + $0x4a8] ss:$16 sps:$4 sm:$0xff]  }
 0x19b   :  { %1985 = vmatprep.subr.bf16.mxu1 %v3650_v48  ;;  %v3704_v48 = vld [vmem:[#allocation7 + $0x4cc] ss:$16 sps:$4 sm:$0xff]  }
 0x19c   :  { %1865 = vmatpush1.bf16.msra.mxu0 %v3645_v50  ;;  %v3777_v50 = vld [vmem:[#allocation8 + $0xa8] ss:$12 sps:$4 sm:$0xff]  }
 0x19d   :  { %1866 = vmatprep.subr.bf16.mxu0 %v3653_v51  ;;  %v3782_v51 = vld [vmem:[#allocation8 + $0xc4] ss:$12 sps:$4 sm:$0xff]  }
 0x19e   :  { %1986 = vmatpush1.bf16.msra.mxu1 %v3648_v52  ;;  %v3702_v52 = vld [vmem:[#allocation7 + $0x4c8] ss:$16 sps:$4 sm:$0xff]  }
 0x19f   :  { %1987 = vmatprep.subr.bf16.mxu1 %v3656_v53  ;;  %v3707_v53 = vld [vmem:[#allocation7 + $0x4ec] ss:$16 sps:$4 sm:$0xff]  }
 0x1a0   :  { %1867 = vmatpush1.bf16.msra.mxu0 %v3651_v54  ;;  %v3780_v54 = vld [vmem:[#allocation8 + $0xc0] ss:$12 sps:$4 sm:$0xff]  }
 0x1a1   :  { %1868 = vmatprep.subr.bf16.mxu0 %v3659_v55  ;;  %v3787_v55 = vld [vmem:[#allocation8 + $0xdc] ss:$12 sps:$4 sm:$0xff]  }
 0x1a2   :  { %1988 = vmatpush1.bf16.msra.mxu1 %v3654_v56  ;;  %v3705_v56 = vld [vmem:[#allocation7 + $0x4e8] ss:$16 sps:$4 sm:$0xff]  }
 0x1a3   :  { %1989 = vmatprep.subr.bf16.mxu1 %v3662_v57  ;;  %v3710_v57 = vld [vmem:[#allocation7 + $0x50c] ss:$16 sps:$4 sm:$0xff]  }
 0x1a4   :  { %1869 = vmatpush1.bf16.msra.mxu0 %v3657_v59  ;;  %v3792_v59 = vld [vmem:[#allocation8 + $0xf4] ss:$12 sps:$4 sm:$0xff]  }
 0x1a5   :  { %1870 = vmatprep.subr.bf16.mxu0 %v3665_v60  ;;  %v3708_v60 = vld [vmem:[#allocation7 + $0x508] ss:$16 sps:$4 sm:$0xff]  }
 0x1a6   :  { %1990 = vmatpush1.bf16.msra.mxu1 %v3660_v61  ;;  %v3713_v61 = vld [vmem:[#allocation7 + $0x52c] ss:$16 sps:$4 sm:$0xff]  }
 0x1a7   :  { %1991 = vmatprep.subr.bf16.mxu1 %v3668_v62  ;;  %v3790_v62 = vld [vmem:[#allocation8 + $0xf0] ss:$12 sps:$4 sm:$0xff]  }
 0x1a8   :  { %1871 = vmatpush1.bf16.msra.mxu0 %v3663_v0  ;;  %v3711_v0 = vld [vmem:[#allocation7 + $0x528] ss:$16 sps:$4 sm:$0xff]  }
 0x1a9   :  { %1872 = vmatprep.subr.bf16.mxu0 %v3671_v2  ;;  %v3716_v2 = vld [vmem:[#allocation7 + $0x54c] ss:$16 sps:$4 sm:$0xff]  }
 0x1aa   :  { %1992 = vmatpush1.bf16.msra.mxu1 %v3666_v3  ;;  %v3795_v3 = vld [vmem:[#allocation8 + $0x108] ss:$12 sps:$4 sm:$0xff]  }
 0x1ab   :  { %1993 = vmatprep.subr.bf16.mxu1 %v3674_v5  ;;  %v3714_v5 = vld [vmem:[#allocation7 + $0x548] ss:$16 sps:$4 sm:$0xff]  }
 0x1ac   :  { %1873 = vmatpush1.bf16.msra.mxu0 %v3669_v6  ;;  %v3719_v6 = vld [vmem:[#allocation7 + $0x56c] ss:$16 sps:$4 sm:$0xff]  }
 0x1ad   :  { %1874 = vmatprep.subr.bf16.mxu0 %v3677_v12  ;;  %v3800_v12 = vld [vmem:[#allocation8 + $0x120] ss:$12 sps:$4 sm:$0xff]  }
 0x1ae   :  { %1994 = vmatpush1.bf16.msra.mxu1 %v3672_v13  ;;  %v3807_v13 = vld [vmem:[#allocation8 + $0x13c] ss:$12 sps:$4 sm:$0xff]  }
 0x1af   :  { %1995 = vmatprep.subr.bf16.mxu1 %v3680_v15  ;;  %v3722_v15 = vld [vmem:[#allocation7 + $0x58c] ss:$16 sps:$4 sm:$0xff]  }
 0x1b0   :  { %1875 = vmatpush1.bf16.msra.mxu0 %v3675_v11  ;;  %v3805_v11 = vld [vmem:[#allocation8 + $0x138] ss:$12 sps:$4 sm:$0xff]  }
 0x1b1   :  { %2755 = vmatprep.subr.bf16.mxu0 %v3758_v17  ;;  %v3720_v17 = vld [vmem:[#allocation7 + $0x588] ss:$16 sps:$4 sm:$0xff]  }
 0x1b2   :  { %1996 = vmatpush1.bf16.msra.mxu1 %v3678_v18  ;;  %v3725_v18 = vld [vmem:[#allocation7 + $0x5ac] ss:$16 sps:$4 sm:$0xff]  }
 0x1b3   :  { %1877 = vmatmul.mubr.bf16.vlgmr.msra.gmra.mrb[8].mxu0 %v4158_v19  ;;  %1997 = vmatprep.subr.bf16.mxu1 %v3683_v39  ;;  %v3723_v39 = vld [vmem:[#allocation7 + $0x5a8] ss:$16 sps:$4 sm:$0xff]  }
 0x1b4   :  { %2756 = vmatpush1.bf16.msra.mxu0 %v3756_v20  ;;  %v3728_v20 = vld [vmem:[#allocation7 + $0x5cc] ss:$16 sps:$4 sm:$0xff]  }
 0x1b5   :  { %2757 = vmatprep.subr.bf16.mxu0 %v3761_v21  ;;  %v3726_v21 = vld [vmem:[#allocation7 + $0x5c8] ss:$16 sps:$4 sm:$0xff]  }
 0x1b6   :  { %1998 = vmatpush1.bf16.msra.mxu1 %v3681_v22  ;;  %v3731_v22 = vld [vmem:[#allocation7 + $0x5ec] ss:$16 sps:$4 sm:$0xff]  }
 0x1b7   :  { %2008 = vmatprep.subr.bf16.mxu1 %v3686_v30  ;;  %v3729_v30 = vld [vmem:[#allocation7 + $0x5e8] ss:$16 sps:$4 sm:$0xff]  }
 0x1b8   :  { %2758 = vmatpush1.bf16.msra.mxu0 %v3759_v23  ;;  %v3734_v23 = vld [vmem:[#allocation7 + $0x60c] ss:$16 sps:$4 sm:$0xff]  }
 0x1b9   :  { %2000 = vmatmul.mubr.bf16.vlgmr.msra.gmra.mrb[12].mxu1 %v4149_v16  ;;  %2759 = vmatprep.subr.bf16.mxu0 %v3764_v24  ;;  %v3773_v16 = vld [vmem:[#allocation8 + $0x7c] ss:$12 sps:$4 sm:$0xff]  }
 0x1ba   :  { %2009 = vmatpush1.bf16.msra.mxu1 %v3684_v35  ;;  %2040 = vmatprep.mubr.bf16.mxu1 %v4147_v63  ;;  %v3771_v63 = vld [vmem:[#allocation8 + $0x78] ss:$12 sps:$4 sm:$0xff]   ;;  %v3737_v35 = vld [vmem:[#allocation7 + $0x62c] ss:$16 sps:$4 sm:$0xff]  }
 0x1bb   :  { %2010 = vmatprep.subr.bf16.mxu1 %v3689_v25  ;;  %v3732_v24 = vld [vmem:[#allocation7 + $0x608] ss:$16 sps:$4 sm:$0xff]  }
 0x1bc   :  { %2760 = vmatpush1.bf16.msra.mxu0 %v3762_v26  ;;  %v3735_v25 = vld [vmem:[#allocation7 + $0x628] ss:$16 sps:$4 sm:$0xff]   ;;  %v3740_v26 = vld [vmem:[#allocation7 + $0x64c] ss:$16 sps:$4 sm:$0xff]  }
 0x1bd   :  { %2761 = vmatprep.subr.bf16.mxu0 %v3767_v27  ;;  %v3738_v27 = vld [vmem:[#allocation7 + $0x648] ss:$16 sps:$4 sm:$0xff]  }
 0x1be   :  { %2011 = vmatpush1.bf16.msra.mxu1 %v3687_v28  ;;  %v3743_v28 = vld [vmem:[#allocation7 + $0x66c] ss:$16 sps:$4 sm:$0xff]  }
 0x1bf   :  { %2012 = vmatprep.subr.bf16.mxu1 %v3692_v29  ;;  %v3741_v29 = vld [vmem:[#allocation7 + $0x668] ss:$16 sps:$4 sm:$0xff]  }
 0x1c0   :  { %2762 = vmatpush1.bf16.msra.mxu0 %v3765_v31  ;;  %v3746_v31 = vld [vmem:[#allocation7 + $0x68c] ss:$16 sps:$4 sm:$0xff]  }
 0x1c1   :  { %2763 = vmatprep.subr.bf16.mxu0 %v3770_v32  ;;  %v3744_v32 = vld [vmem:[#allocation7 + $0x688] ss:$16 sps:$4 sm:$0xff]  }
 0x1c2   :  { %2013 = vmatpush1.bf16.msra.mxu1 %v3690_v33  ;;  %v3749_v33 = vld [vmem:[#allocation7 + $0x6ac] ss:$16 sps:$4 sm:$0xff]  }
 0x1c3   :  { %2014 = vmatprep.subr.bf16.mxu1 %v3695_v34  ;;  %v3812_v34 = vld [vmem:[#allocation8 + $0x154] ss:$12 sps:$4 sm:$0xff]  }
 0x1c4   :  { %2764 = vmatpush1.bf16.msra.mxu0 %v3768_v36  ;;  %v3747_v36 = vld [vmem:[#allocation7 + $0x6a8] ss:$16 sps:$4 sm:$0xff]  }
 0x1c5   :  { %2765 = vmatprep.subr.bf16.mxu0 %v3773_v16  ;;  %v3817_v16 = vld [vmem:[#allocation8 + $0x16c] ss:$12 sps:$4 sm:$0xff]  }
 0x1c6   :  { %2015 = vmatpush1.bf16.msra.mxu1 %v3693_v37 }
 0x1c7   :  { %2016 = vmatprep.subr.bf16.mxu1 %v3698_v40  ;;  %v3815_v40 = vld [vmem:[#allocation8 + $0x168] ss:$12 sps:$4 sm:$0xff]  }
 0x1c8   :  { %2766 = vmatpush1.bf16.msra.mxu0 %v3771_v63 }
 0x1c9   :  { %2767 = vmatprep.subr.bf16.mxu0 %v3776_v41 }
 0x1ca   :  { %2017 = vmatpush1.bf16.msra.mxu1 %v3696_v43  ;;  %v3750_v43 = vld [vmem:[#allocation7 + $0x6c8] ss:$16 sps:$4 sm:$0xff]  }
 0x1cb   :  { %2018 = vmatprep.subr.bf16.mxu1 %v3701_v44 }
 0x1cc   :  { %2768 = vmatpush1.bf16.msra.mxu0 %v3774_v45  ;;  %v3755_v45 = vld [vmem:[#allocation7 + $0x6ec] ss:$16 sps:$4 sm:$0xff]  }
 0x1cd   :  { %2769 = vmatprep.subr.bf16.mxu0 %v3779_v46  ;;  %v3822_v46 = vld [vmem:[#allocation8 + $0x184] ss:$12 sps:$4 sm:$0xff]  }
 0x1ce   :  { %2019 = vmatpush1.bf16.msra.mxu1 %v3699_v47  ;;  %v3753_v47 = vld [vmem:[#allocation7 + $0x6e8] ss:$16 sps:$4 sm:$0xff]  }
 0x1cf   :  { %2020 = vmatprep.subr.bf16.mxu1 %v3704_v48  ;;  %v3783_v48 = vld [vmem:[#allocation8 + $0xc8] ss:$12 sps:$4 sm:$0xff]  }
 0x1d0   :  { %2770 = vmatpush1.bf16.msra.mxu0 %v3777_v50  ;;  %v3784_v50 = vld [vmem:[#allocation8 + $0x8] ss:$12 sps:$4 sm:$0xff]  }
 0x1d1   :  { %2771 = vmatprep.subr.bf16.mxu0 %v3782_v51  ;;  %v3788_v51 = vld [vmem:[#allocation8 + $0xe0] ss:$12 sps:$4 sm:$0xff]  }
 0x1d2   :  { %2021 = vmatpush1.bf16.msra.mxu1 %v3702_v52  ;;  %v3789_v52 = vld [vmem:[#allocation8 + $0x20] ss:$12 sps:$4 sm:$0xff]  }
 0x1d3   :  { %2022 = vmatprep.subr.bf16.mxu1 %v3707_v53  ;;  %v3793_v53 = vld [vmem:[#allocation8 + $0xf8] ss:$12 sps:$4 sm:$0xff]  }
 0x1d4   :  { %2772 = vmatpush1.bf16.msra.mxu0 %v3780_v54  ;;  %v3794_v54 = vld [vmem:[#allocation8 + $0x38] ss:$12 sps:$4 sm:$0xff]  }
 0x1d5   :  { %2773 = vmatprep.subr.bf16.mxu0 %v3787_v55  ;;  %v3798_v55 = vld [vmem:[#allocation8 + $0x110] ss:$12 sps:$4 sm:$0xff]  }
 0x1d6   :  { %2023 = vmatpush1.bf16.msra.mxu1 %v3705_v56  ;;  %v3799_v56 = vld [vmem:[#allocation8 + $0x50] ss:$12 sps:$4 sm:$0xff]  }
 0x1d7   :  { %2024 = vmatprep.subr.bf16.mxu1 %v3710_v57  ;;  %v3803_v57 = vld [vmem:[#allocation8 + $0x128] ss:$12 sps:$4 sm:$0xff]  }
 0x1d8   :  { %2774 = vmatpush1.bf16.msra.mxu0 %v3785_v58  ;;  %v3804_v58 = vld [vmem:[#allocation8 + $0x68] ss:$12 sps:$4 sm:$0xff]  }
 0x1d9   :  { %2775 = vmatprep.subr.bf16.mxu0 %v3792_v59  ;;  %v3808_v59 = vld [vmem:[#allocation8 + $0x140] ss:$12 sps:$4 sm:$0xff]  }
 0x1da   :  { %2025 = vmatpush1.bf16.msra.mxu1 %v3708_v60  ;;  %v3809_v60 = vld [vmem:[#allocation8 + $0x80] ss:$12 sps:$4 sm:$0xff]  }
 0x1db   :  { %2026 = vmatprep.subr.bf16.mxu1 %v3713_v61  ;;  %v3814_v61 = vld [vmem:[#allocation8 + $0x98] ss:$12 sps:$4 sm:$0xff]  }
 0x1dc   :  { %2776 = vmatpush1.bf16.msra.mxu0 %v3790_v62  ;;  %v3818_v62 = vld [vmem:[#allocation8 + $0x170] ss:$12 sps:$4 sm:$0xff]  }
 0x1dd   :  { %2777 = vmatprep.subr.bf16.mxu0 %v3797_v42  ;;  %v3819_v42 = vld [vmem:[#allocation8 + $0xb0] ss:$12 sps:$4 sm:$0xff]  }
 0x1de   :  { %2027 = vmatpush1.bf16.msra.mxu1 %v3711_v0  ;;  %v3847_v0 = vld [vmem:[#allocation8 + $0x248] ss:$12 sps:$4 sm:$0xff]  }
 0x1df   :  { %2028 = vmatprep.subr.bf16.mxu1 %v3716_v2  ;;  %v4169_v2 = vld [vmem:[%s4199_s4] sm:$0xf] }
 0x1e0   :  { %2778 = vmatpush1.bf16.msra.mxu0 %v3795_v3  ;;  %v625_v3 = vrot.slane %v4169_v2, %v4103_v8 }
 0x1e1   :  { %2779 = vmatprep.subr.bf16.mxu0 %v3802_v4  ;;  %v629_v4 = vrot.slane %v4169_v2, %v4106_v9 }
 0x1e2   :  { %2029 = vmatpush1.bf16.msra.mxu1 %v3714_v5 }
 0x1e3   :  { %2030 = vmatprep.subr.bf16.mxu1 %v3719_v6 }
 0x1e4   :  { %2780 = vmatpush1.bf16.msra.mxu0 %v3800_v12 }
 0x1e5   :  { %2781 = vmatprep.subr.bf16.mxu0 %v3807_v13 }
 0x1e6   :  { %2031 = vmatpush1.bf16.msra.mxu1 %v3717_v14 }
 0x1e7   :  { %2032 = vmatprep.subr.bf16.mxu1 %v3722_v15 }
 0x1e8   :  { %2782 = vmatpush1.bf16.msra.mxu0 %v3805_v11 }
 0x1e9   :  { %2783 = vmatprep.subr.bf16.mxu0 %v3812_v34  ;;  %v3863_v34 = vld [vmem:[#allocation8 + $0x1d0] ss:$12 sps:$4 sm:$0xff]  }
 0x1ea   :  { %2033 = vmatpush1.bf16.msra.mxu1 %v3720_v17 }
 0x1eb   :  { %2034 = vmatprep.subr.bf16.mxu1 %v3725_v18 }
 0x1ee   :  { %2035 = vmatpush1.bf16.msra.mxu1 %v3723_v39 }
 0x1ef   :  { %2036 = vmatprep.subr.bf16.mxu1 %v3728_v20 }
 0x1f2   :  { %2037 = vmatpush1.bf16.msra.mxu1 %v3726_v21  ;;  %v3820_v21 = vld [vmem:[#allocation8 + $0x180] ss:$12 sps:$4 sm:$0xff]  }
 0x1f3   :  { %2038 = vmatprep.subr.bf16.mxu1 %v3731_v22  ;;  %v3848_v22 = vld [vmem:[#allocation8 + $0x188] ss:$12 sps:$4 sm:$0xff]  }
 0x1f6   :  { %2039 = vmatpush1.bf16.msra.mxu1 %v3729_v30 }
 0x1f7   :  { %2049 = vmatprep.subr.bf16.mxu1 %v3734_v23  ;;  %v3825_v23 = vld [vmem:[#allocation8 + $0x19c] ss:$12 sps:$4 sm:$0xff]  }
 0x1f9   :  { %2041 = vmatmul.mubr.bf16.vlgmr.msra.gmra.mrb[12].mxu1 %v4158_v19  ;;  %v3810_v19 = vld [vmem:[#allocation8 + $0x150] ss:$12 sps:$4 sm:$0xff]  }
 0x1fa   :  { %2050 = vmatpush1.bf16.msra.mxu1 %v3732_v24  ;;  %2081 = vmatprep.mubr.bf16.mxu1 %v3988_v1  ;;  %v3752_v1 = vld [vmem:[#allocation7 + $0x6cc] ss:$16 sps:$4 sm:$0xff]  }
 0x1fb   :  { %2051 = vmatprep.subr.bf16.mxu1 %v3737_v35  ;;  %2784 = vmatpush1.bf16.msra.mxu0 %v3810_v19  ;;  %v3852_v24 = vld [vmem:[#allocation8 + $0x260] ss:$12 sps:$4 sm:$0xff]   ;;  %v3823_v35 = vld [vmem:[#allocation8 + $0x198] ss:$12 sps:$4 sm:$0xff]  }
 0x1fc   :  { %2785 = vmatprep.subr.bf16.mxu0 %v3817_v16  ;;  %v3834_v19 = vld [vmem:[#allocation8 + $0x1e4] ss:$12 sps:$4 sm:$0xff]   ;;  %v3868_v16 = vld [vmem:[#allocation8 + $0x1e8] ss:$12 sps:$4 sm:$0xff]  }
 0x1fe   :  { %2052 = vmatpush1.bf16.msra.mxu1 %v3735_v25  ;;  %v3853_v25 = vld [vmem:[#allocation8 + $0x1a0] ss:$12 sps:$4 sm:$0xff]  }
 0x1ff   :  { %2053 = vmatprep.subr.bf16.mxu1 %v3740_v26  ;;  %2786 = vmatpush1.bf16.msra.mxu0 %v3815_v40  ;;  %v3828_v26 = vld [vmem:[#allocation8 + $0x1b4] ss:$12 sps:$4 sm:$0xff]  }
 0x200   :  { %2796 = vmatprep.subr.bf16.mxu0 %v3822_v46  ;;  %v3872_v40 = vld [vmem:[#allocation8 + $0x2c0] ss:$12 sps:$4 sm:$0xff]   ;;  %v3878_v46 = vld [vmem:[#allocation8 + $0x218] ss:$12 sps:$4 sm:$0xff]  }
 0x202   :  { %2054 = vmatpush1.bf16.msra.mxu1 %v3738_v27  ;;  %v3857_v27 = vld [vmem:[#allocation8 + $0x278] ss:$12 sps:$4 sm:$0xff]  }
 0x203   :  { %2055 = vmatprep.subr.bf16.mxu1 %v3743_v28  ;;  %v3826_v28 = vld [vmem:[#allocation8 + $0x1b0] ss:$12 sps:$4 sm:$0xff]  }
 0x206   :  { %2056 = vmatpush1.bf16.msra.mxu1 %v3741_v29  ;;  %v3858_v29 = vld [vmem:[#allocation8 + $0x1b8] ss:$12 sps:$4 sm:$0xff]  }
 0x207   :  { %2057 = vmatprep.subr.bf16.mxu1 %v3746_v31  ;;  %v3831_v31 = vld [vmem:[#allocation8 + $0x1cc] ss:$12 sps:$4 sm:$0xff]  }
 0x20a   :  { %2058 = vmatpush1.bf16.msra.mxu1 %v3744_v32  ;;  %v3862_v32 = vld [vmem:[#allocation8 + $0x290] ss:$12 sps:$4 sm:$0xff]  }
 0x20b   :  { %2059 = vmatprep.subr.bf16.mxu1 %v3749_v33  ;;  %v3829_v33 = vld [vmem:[#allocation8 + $0x1c8] ss:$12 sps:$4 sm:$0xff]  }
 0x20c   :  { %v1919_v37 = vpop.f32.mrb[8].mxu1 }
 0x20d   :  { %v1921_v63 = vpop.f32.mrb[9].mxu1 }
 0x20e   :  { %2060 = vmatpush1.bf16.msra.mxu1 %v3747_v36  ;;  %v1923_v41 = vpop.f32.mrb[10].mxu1  ;;  %v3867_v36 = vld [vmem:[#allocation8 + $0x2a8] ss:$12 sps:$4 sm:$0xff]  }
 0x20f   :  { %v1924_v44 = vpop.f32.mrb[11].mxu1  ;;  %2061 = vmatprep.subr.bf16.mxu1 %v3752_v1  ;;  %v3832_v1 = vld [vmem:[#allocation8 + $0x1e0] ss:$12 sps:$4 sm:$0xff]  }
 0x210   :  { %v3873_v41 = vld [vmem:[#allocation8 + $0x200] ss:$12 sps:$4 sm:$0xff]   ;;  %v3877_v44 = vld [vmem:[#allocation8 + $0x2d8] ss:$12 sps:$4 sm:$0xff]  }
 0x212   :  { %2062 = vmatpush1.bf16.msra.mxu1 %v3750_v43  ;;  %v3840_v43 = vld [vmem:[#allocation8 + $0x214] ss:$12 sps:$4 sm:$0xff]  }
 0x213   :  { %2063 = vmatprep.subr.bf16.mxu1 %v3755_v45  ;;  %v3838_v45 = vld [vmem:[#allocation8 + $0x210] ss:$12 sps:$4 sm:$0xff]  }
 0x216   :  { %2064 = vmatpush1.bf16.msra.mxu1 %v3753_v47  ;;  %v3843_v47 = vld [vmem:[#allocation8 + $0x22c] ss:$12 sps:$4 sm:$0xff]  }
 0x217   :  { %3303 = vmatprep.subr.bf16.mxu1 %v3783_v48  ;;  %v3882_v48 = vld [vmem:[#allocation8 + $0x2f0] ss:$12 sps:$4 sm:$0xff]  }
 0x219   :  { %2082 = vmatmul.mubr.bf16.vlgmr.msra.gmra.mrb[12].mxu1 %v4135_v49  ;;  %v3813_v49 = vld [vmem:[#allocation8 + $0x158] ss:$12 sps:$4 sm:$0xff]  }
 0x21a   :  { %3304 = vmatpush3.bf16.msra.mxu1 %v3784_v50  ;;  %v3841_v50 = vld [vmem:[#allocation8 + $0x228] ss:$12 sps:$4 sm:$0xff]  }
 0x21b   :  { %3305 = vmatprep.subr.bf16.mxu1 %v3788_v51  ;;  %v3883_v51 = vld [vmem:[#allocation8 + $0x230] ss:$12 sps:$4 sm:$0xff]  }
 0x21e   :  { %3306 = vmatpush3.bf16.msra.mxu1 %v3789_v52  ;;  %v3846_v52 = vld [vmem:[#allocation8 + $0x244] ss:$12 sps:$4 sm:$0xff]  }
 0x21f   :  { %3307 = vmatprep.subr.bf16.mxu1 %v3793_v53  ;;  %v3844_v53 = vld [vmem:[#allocation8 + $0x240] ss:$12 sps:$4 sm:$0xff]  }
 0x222   :  { %3308 = vmatpush3.bf16.msra.mxu1 %v3794_v54  ;;  %v3851_v54 = vld [vmem:[#allocation8 + $0x25c] ss:$12 sps:$4 sm:$0xff]  }
 0x223   :  { %3309 = vmatprep.subr.bf16.mxu1 %v3798_v55  ;;  %v3849_v55 = vld [vmem:[#allocation8 + $0x258] ss:$12 sps:$4 sm:$0xff]  }
 0x226   :  { %3310 = vmatpush3.bf16.msra.mxu1 %v3799_v56  ;;  %v3856_v56 = vld [vmem:[#allocation8 + $0x274] ss:$12 sps:$4 sm:$0xff]  }
 0x227   :  { %3311 = vmatprep.subr.bf16.mxu1 %v3803_v57  ;;  %v3854_v57 = vld [vmem:[#allocation8 + $0x270] ss:$12 sps:$4 sm:$0xff]  }
 0x22a   :  { %3312 = vmatpush3.bf16.msra.mxu1 %v3804_v58  ;;  %v3861_v58 = vld [vmem:[#allocation8 + $0x28c] ss:$12 sps:$4 sm:$0xff]  }
 0x22b   :  { %3313 = vmatprep.subr.bf16.mxu1 %v3808_v59  ;;  %v3859_v59 = vld [vmem:[#allocation8 + $0x288] ss:$12 sps:$4 sm:$0xff]  }
 0x22e   :  { %3314 = vmatpush3.bf16.msra.mxu1 %v3809_v60  ;;  %v3866_v60 = vld [vmem:[#allocation8 + $0x2a4] ss:$12 sps:$4 sm:$0xff]  }
 0x22f   :  { %3315 = vmatprep.subr.bf16.mxu1 %v3813_v49  ;;  %v3864_v49 = vld [vmem:[#allocation8 + $0x2a0] ss:$12 sps:$4 sm:$0xff]  }
 0x232   :  { %3316 = vmatpush3.bf16.msra.mxu1 %v3814_v61  ;;  %v3871_v61 = vld [vmem:[#allocation8 + $0x2bc] ss:$12 sps:$4 sm:$0xff]  }
 0x233   :  { %3317 = vmatprep.subr.bf16.mxu1 %v3818_v62  ;;  %v3869_v62 = vld [vmem:[#allocation8 + $0x2b8] ss:$12 sps:$4 sm:$0xff]  }
 0x236   :  { %3318 = vmatpush3.bf16.msra.mxu1 %v3819_v42  ;;  %v3876_v42 = vld [vmem:[#allocation8 + $0x2d4] ss:$12 sps:$4 sm:$0xff]  }
 0x237   :  { %3325 = vmatprep.subr.bf16.mxu1 %v3847_v0  ;;  %v3874_v0 = vld [vmem:[#allocation8 + $0x2d0] ss:$12 sps:$4 sm:$0xff]  }
 0x286   :  { %v1878_v5 = vpop.f32.mrb[8].mxu0 }
 0x287   :  { %v3355_v6 = vadd.f32 %v1878_v5, %v625_v3  ;;  %v1880_v12 = vpop.f32.mrb[9].mxu0  ;;  %v3881_v3 = vld [vmem:[#allocation8 + $0x2ec] ss:$12 sps:$4 sm:$0xff]   ;;  %v633_v5 = vrot.slane %v4169_v2, %v4140_v38 }
 0x288   :  { %v3357_v13 = vadd.f32 %v1880_v12, %v629_v4  ;;  %v1882_v14 = vpop.f32.mrb[10].mxu0  ;;  %v3879_v4 = vld [vmem:[#allocation8 + $0x2e8] ss:$12 sps:$4 sm:$0xff]  }
 0x289   :  { %v3356_v15 = vadd.f32 %v3355_v6, %v1919_v37  ;;  %v1883_v11 = vpop.f32.mrb[11].mxu0  ;;  %v3837_v37 = vld [vmem:[#allocation8 + $0x1fc] ss:$12 sps:$4 sm:$0xff]   ;;  %v637_v6 = vrot.slane %v4169_v2, %v122_v10 }
 0x28a   :  { %v3358_v17 = vadd.f32 %v3357_v13, %v1921_v63  ;;  %v3835_v63 = vld [vmem:[#allocation8 + $0x1f8] ss:$12 sps:$4 sm:$0xff]  }
 0x28b   :  { %v2090_v18 = vmax.f32 %v3356_v15, 0.0  ;;  %v2226_v10 = vld [vmem:[%s4201_s6] sm:$0x7] }
 0x28c   :  { %v2091_v39 = vmax.f32 %v3358_v17, 0.0  ;;  %v2231_v2 = vrot.slane %v2226_v10, %v4103_v8 }
 0x28d   :  { %v2094_v30 = vpack.c.bf16 %v2090_v18, %v2090_v18 }
 0x28e   :  { %v2095_v20 = vpack.c.bf16 %v2091_v39, %v2091_v39 }
 0x290   :  { %2787 = vmatprep.mubr.bf16.mxu0 %v2095_v20  ;;  %2869 = vmatprep.mubr.bf16.mxu1 %v2095_v20 }
 0x291   :  { %2788 = vmatmul.mubr.bf16.vlgmr.msra.gmra.mrb[12].mxu0 %v2094_v30  ;;  %2870 = vmatmul.mubr.bf16.vlgmr.msra.gmra.mrb[16].mxu1 %v2094_v30 }
 0x292   :  { %2797 = vmatpush1.bf16.msra.mxu0 %v3820_v21  ;;  %3326 = vmatpush3.bf16.msra.mxu1 %v3848_v22 }
 0x293   :  { %2798 = vmatprep.subr.bf16.mxu0 %v3825_v23  ;;  %3327 = vmatprep.subr.bf16.mxu1 %v3852_v24 }
 0x296   :  { %2799 = vmatpush1.bf16.msra.mxu0 %v3823_v35  ;;  %3328 = vmatpush3.bf16.msra.mxu1 %v3853_v25  ;;  %v2239_v35 = vrot.slane %v2226_v10, %v4140_v38  ;;  %v2920_v25 = vld [vmem:[%s4202_s7] sm:$0x7] }
 0x297   :  { %2800 = vmatprep.subr.bf16.mxu0 %v3828_v26  ;;  %3329 = vmatprep.subr.bf16.mxu1 %v3857_v27  ;;  %v2235_v26 = vrot.slane %v2226_v10, %v4106_v9 }
 0x29a   :  { %2801 = vmatpush1.bf16.msra.mxu0 %v3826_v28  ;;  %3330 = vmatpush3.bf16.msra.mxu1 %v3858_v29 }
 0x29b   :  { %2802 = vmatprep.subr.bf16.mxu0 %v3831_v31  ;;  %3331 = vmatprep.subr.bf16.mxu1 %v3862_v32  ;;  %v2925_v31 = vrot.slane %v2920_v25, %v4103_v8 }
 0x29e   :  { %2803 = vmatpush1.bf16.msra.mxu0 %v3829_v33  ;;  %3332 = vmatpush3.bf16.msra.mxu1 %v3863_v34 }
 0x29f   :  { %2804 = vmatprep.subr.bf16.mxu0 %v3834_v19  ;;  %3333 = vmatprep.subr.bf16.mxu1 %v3867_v36  ;;  %v2929_v36 = vrot.slane %v2920_v25, %v4106_v9 }
 0x2a2   :  { %2805 = vmatpush1.bf16.msra.mxu0 %v3832_v1  ;;  %3334 = vmatpush3.bf16.msra.mxu1 %v3868_v16 }
 0x2a3   :  { %2806 = vmatprep.subr.bf16.mxu0 %v3837_v37  ;;  %3335 = vmatprep.subr.bf16.mxu1 %v3872_v40 }
 0x2a6   :  { %2807 = vmatpush1.bf16.msra.mxu0 %v3835_v63  ;;  %3336 = vmatpush3.bf16.msra.mxu1 %v3873_v41 }
 0x2a7   :  { %2808 = vmatprep.subr.bf16.mxu0 %v3840_v43  ;;  %3337 = vmatprep.subr.bf16.mxu1 %v3877_v44 }
 0x2aa   :  { %2809 = vmatpush1.bf16.msra.mxu0 %v3838_v45  ;;  %3338 = vmatpush3.bf16.msra.mxu1 %v3878_v46  ;;  %v2933_v45 = vrot.slane %v2920_v25, %v4140_v38 }
 0x2ab   :  { %2810 = vmatprep.subr.bf16.mxu0 %v3843_v47  ;;  %3339 = vmatprep.subr.bf16.mxu1 %v3882_v48 }
 0x2ae   :  { %2811 = vmatpush1.bf16.msra.mxu0 %v3841_v50  ;;  %3340 = vmatpush3.bf16.msra.mxu1 %v3883_v51 }
 0x2af   :  { %2812 = vmatprep.subr.bf16.mxu0 %v3846_v52  ;;  %v3299_v52 = vld [vmem:[#allocation2] ss:$0 sm:$0xff] }
 0x2b2   :  { %2813 = vmatpush1.bf16.msra.mxu0 %v3844_v53 }
 0x2b3   :  { %2814 = vmatprep.subr.bf16.mxu0 %v3851_v54 }
 0x2b6   :  { %2815 = vmatpush1.bf16.msra.mxu0 %v3849_v55 }
 0x2b7   :  { %2816 = vmatprep.subr.bf16.mxu0 %v3856_v56 }
 0x2ba   :  { %2817 = vmatpush1.bf16.msra.mxu0 %v3854_v57 }
 0x2bb   :  { %2818 = vmatprep.subr.bf16.mxu0 %v3861_v58 }
 0x2be   :  { %2819 = vmatpush1.bf16.msra.mxu0 %v3859_v59 }
 0x2bf   :  { %2820 = vmatprep.subr.bf16.mxu0 %v3866_v60 }
 0x2c2   :  { %2821 = vmatpush1.bf16.msra.mxu0 %v3864_v49 }
 0x2c3   :  { %2822 = vmatprep.subr.bf16.mxu0 %v3871_v61 }
 0x2c6   :  { %2823 = vmatpush1.bf16.msra.mxu0 %v3869_v62 }
 0x2c7   :  { %2824 = vmatprep.subr.bf16.mxu0 %v3876_v42 }
 0x2ca   :  { %2825 = vmatpush1.bf16.msra.mxu0 %v3874_v0 }
 0x2cb   :  { %2826 = vmatprep.subr.bf16.mxu0 %v3881_v3 }
 0x2ce   :  { %2827 = vmatpush1.bf16.msra.mxu0 %v3879_v4 }
 0x2ec   :  { %v2083_v12 = vpop.f32.mrb[12].mxu1 }
 0x2ed   :  { %v3359_v13 = vadd.f32 %v2083_v12, %v633_v5  ;;  %v2085_v14 = vpop.f32.mrb[13].mxu1 }
 0x2ee   :  { %v3360_v15 = vadd.f32 %v2085_v14, %v637_v6  ;;  %v2087_v11 = vpop.f32.mrb[14].mxu1 }
 0x2ef   :  { %v2092_v17 = vmax.f32 %v3359_v13, 0.0  ;;  %v2088_v18 = vpop.f32.mrb[15].mxu1 }
 0x2f0   :  { %v2093_v39 = vmax.f32 %v3360_v15, 0.0 }
 0x2f1   :  { %v2096_v21 = vpack.c.bf16 %v2092_v17, %v2092_v17 }
 0x2f2   :  { %v2097_v20 = vpack.c.bf16 %v2093_v39, %v2093_v39 }
 0x2f4   :  { %2828 = vmatprep.mubr.bf16.mxu0 %v2097_v20  ;;  %2909 = vmatprep.mubr.bf16.mxu1 %v2097_v20 }
 0x2f5   :  { %2829 = vmatmul.mubr.bf16.vlgmr.msra.gmra.mrb[12].mxu0 %v2096_v21  ;;  %2910 = vmatmul.mubr.bf16.vlgmr.msra.gmra.mrb[20].mxu1 %v2096_v21 }
 0x364   :  { %v3319_v22 = vpop.f32.mrb[16].mxu1 }
 0x365   :  { %v3320_v30 = vpop.f32.mrb[17].mxu1 }
 0x366   :  { %v3321_v23 = vadd.f32 %v3320_v30, %v3319_v22  ;;  %v3322_v7 = vpop.f32.mrb[18].mxu1 }
 0x367   :  { %v3323_v24 = vpop.f32.mrb[19].mxu1 }
 0x368   :  { %v2872_v34 = vadd.f32 %v3321_v23, %v2239_v35 }
 0x3c8   :  { %v2830_v27 = vpop.f32.mrb[12].mxu0  ;;  %v3341_v28 = vpop.f32.mrb[20].mxu1 }
 0x3c9   :  { %v3361_v29 = vadd.f32 %v2830_v27, %v2231_v2  ;;  %v2832_v32 = vpop.f32.mrb[13].mxu0  ;;  %v3342_v33 = vpop.f32.mrb[21].mxu1 }
 0x3ca   :  { %v3362_v19 = vadd.f32 %v2832_v32, %v2235_v26  ;;  %v3343_v1 = vadd.f32 %v3342_v33, %v3341_v28  ;;  %v2834_v16 = vpop.f32.mrb[14].mxu0  ;;  %v3344_v37 = vpop.f32.mrb[22].mxu1 }
 0x3cb   :  { %v2917_v40 = vmax.f32 %v3361_v29, 0.0  ;;  %v2835_v63 = vpop.f32.mrb[15].mxu0  ;;  %v3345_v41 = vpop.f32.mrb[23].mxu1 }
 0x3cc   :  { %v2918_v43 = vmax.f32 %v3362_v19, 0.0  ;;  %v2912_v44 = vadd.f32 %v3343_v1, %v2872_v34 }
 0x3cd   :  { %v2937_v46 = vmul.f32 %v2925_v31, %v2917_v40 }
 0x3ce   :  { %v2938_v47 = vmul.f32 %v2929_v36, %v2918_v43  ;;  %v2919_v48 = vmax.f32 %v2912_v44, 0.0 }
 0x3d0   :  { %v2939_v8 = vmul.f32 %v2933_v45, %v2919_v48  ;;  %v2940_v50 = vadd.f32 %v2938_v47, %v2937_v46 }
 0x3d2   :  { %v2941_v51 = vadd.f32 %v2940_v50, %v2939_v8 }
 0x3d4   :  { %2942 = vadd.xlane.f32.xlu0 %v2941_v51 }
 0x461   :  { %v2943_v53 = vpop.xlane.xlu0 %2942 }
 0x462   :  { %v2951_v9 = vadd.f32 %v3299_v52, %v2943_v53 }
 0x464   :  { %2953 = vst.msk [vmem:[%s4204_s9] sm:$0xff] %vm2952_vm2, %v2951_v9 }
 0x465   :  { %2958 = vsyncpa [#allocation4], 1 }
 0x466   :  { %2959 = vsyncpa [#allocation6], 1 }
 0x467   :  { %2960 = vsyncpa [#allocation9], 1 }

</bundles_post_ra>
